<compile_context>
chip_gen: v5e
topology: v5e:2x2
jax: 0.10.0
libtpu: 0.0.40
codegen_flags: <defaults>
</compile_context>

<pallas_src>
import functools

import jax
import jax.numpy as jnp
from jax.experimental import pallas as pl
from jax.experimental.pallas import tpu as pltpu

HEAD_DIM = 64          # PyTorch: nhead = hidden // 64
LN_EPS = 1e-5          # nn.LayerNorm default
FF_CHUNK = 512         # tile width over the 4*H FFN inner dimension


def _round_up(x, m):
    return (x + m - 1) // m * m


# ---------------------------------------------------------------------------
# in-kernel helpers (f32)
# ---------------------------------------------------------------------------
def _gelu(x):
    # tanh-approximate GELU: tanh runs on the EUP slot, freeing VALU bandwidth.
    # TODO(synk): reference nn.GELU() is exact-erf; tanh approx deviates ~1e-3.
    c = jnp.float32(0.7978845608028654)      # sqrt(2/pi)
    return 0.5 * x * (1.0 + jnp.tanh(c * (x + 0.044715 * x * x * x)))


def _layernorm(x, w, b):
    mu = jnp.mean(x, axis=-1, keepdims=True)
    var = jnp.mean((x - mu) ** 2, axis=-1, keepdims=True)
    return (x - mu) * jax.lax.rsqrt(var + LN_EPS) * w + b


# ---------------------------------------------------------------------------
# hardware-aware sizing (generation-aware VMEM limit & batch tile)
# ---------------------------------------------------------------------------
def _vmem_capacity_bytes():
    try:
        info = pltpu.get_tpu_info()
        cap = getattr(info, "vmem_capacity_bytes", None)
        if cap:
            return int(cap)
    except Exception:
        pass
    return 64 * 2 ** 20                      # conservative default (v7x per-TC VMEM)


def _encoder_footprint_bytes(bt, S, H, ff_chunk):
    m = bt * S
    weights = 2 * 24 * H * H                 # bf16 per-layer weights, double-buffered
    biases = 2 * 20 * H * 4
    acts = 12 * m * H                        # bf16 in (x2) + bf16 out (x2) + f32 scratch
    qkv = 6 * m * H                          # q/k/v bf16
    attn_tmp = 2 * m * H * 4 + 2 * m * H     # attn / post-LN f32 + ctx bf16
    scores = 2 * bt * S * S * 4              # per-head scores + probs (f32)
    ffn = 6 * m * ff_chunk + 4 * m * H       # h1 chunk (f32 + bf16) + ff accumulator
    return weights + biases + acts + qkv + attn_tmp + scores + ffn


def _pick_batch_tile(B, S, H, ff_chunk, cap):
    budget = max(24 * 2 ** 20, int(0.55 * cap))
    best = 1
    for d in range(1, B + 1):
        if B % d:
            continue
        if B >= 2 and B // d < 2:
            continue                         # keep >= 2 tiles: v7x dual-TC / megacore
        if _encoder_footprint_bytes(d, S, H, ff_chunk) <= budget:
            best = max(best, d)
    return best


def _encoder_vmem_limit(bt, S, H, ff_chunk, cap):
    est = _encoder_footprint_bytes(bt, S, H, ff_chunk)
    return int(min(max(32 * 2 ** 20, 2 * est), int(0.92 * cap), 128 * 2 ** 20))


# ---------------------------------------------------------------------------
# Pallas kernel: fused transformer stack
#   grid = (batch_tiles, layers); residual stream resident in an f32 VMEM
#   scratch across the layer axis; bf16 output written only at the last layer.
# ---------------------------------------------------------------------------
def encoder_stack_kernel(x_ref, wq_ref, bq_ref, wk_ref, bk_ref, wv_ref, bv_ref,
                         wo_ref, bo_ref, ln1w_ref, ln1b_ref, w1_ref, b1_ref,
                         w2_ref, b2_ref, ln2w_ref, ln2b_ref, o_ref, resid_ref,
                         *, num_heads, ff_chunk):
    layer = pl.program_id(1)
    bt, s, hidden = o_ref.shape
    m = bt * s
    dh = hidden // num_heads

    @pl.when(layer == 0)
    def _():
        resid_ref[...] = x_ref[...].reshape(m, hidden).astype(jnp.float32)

    x = resid_ref[...]                       # (m, H) f32 residual stream
    x_bf = x.astype(jnp.bfloat16)

    # --- multi-head self-attention (bf16 MXU, f32 accumulate / stats) --------
    scale = jnp.float32(1.0 / float(dh) ** 0.5)
    q = (jnp.dot(x_bf, wq_ref[0], preferred_element_type=jnp.float32)
         + bq_ref[0]) * scale
    k = jnp.dot(x_bf, wk_ref[0], preferred_element_type=jnp.float32) + bk_ref[0]
    v = jnp.dot(x_bf, wv_ref[0], preferred_element_type=jnp.float32) + bv_ref[0]
    q = q.astype(jnp.bfloat16).reshape(bt, s, hidden)
    k = k.astype(jnp.bfloat16).reshape(bt, s, hidden)
    v = v.astype(jnp.bfloat16).reshape(bt, s, hidden)

    ctx_parts = []
    for h in range(num_heads):
        sl = slice(h * dh, (h + 1) * dh)
        sc = jnp.einsum('bqd,bkd->bqk', q[:, :, sl], k[:, :, sl],
                        preferred_element_type=jnp.float32)       # (bt, s, s)
        sc = sc - jnp.max(sc, axis=-1, keepdims=True)
        p = jnp.exp(sc)
        p = p * pl.reciprocal(jnp.sum(p, axis=-1, keepdims=True), approx=True)
        ctx = jnp.einsum('bqk,bkd->bqd', p.astype(jnp.bfloat16), v[:, :, sl],
                         preferred_element_type=jnp.float32)      # (bt, s, dh)
        ctx_parts.append(ctx.astype(jnp.bfloat16))
    # head-major assembly -> ONE full-K (H) output projection on the MXU
    ctx = jnp.concatenate(ctx_parts, axis=-1).reshape(m, hidden)
    attn = jnp.dot(ctx, wo_ref[0], preferred_element_type=jnp.float32) + bo_ref[0]

    x = _layernorm(x + attn, ln1w_ref[0], ln1b_ref[0])            # post-norm

    # --- feed-forward, tiled over the 4H inner dimension ----------------------
    ffdim = w1_ref.shape[-1]
    x1_bf = x.astype(jnp.bfloat16)
    ff = jnp.zeros((m, hidden), jnp.float32)
    n_chunks = (ffdim + ff_chunk - 1) // ff_chunk
    for c in range(n_chunks):
        lo = c * ff_chunk
        hi = min(ffdim, lo + ff_chunk)
        h1 = (jnp.dot(x1_bf, w1_ref[0, :, lo:hi],
                      preferred_element_type=jnp.float32) + b1_ref[0, :, lo:hi])
        h1 = _gelu(h1)
        ff = ff + jnp.dot(h1.astype(jnp.bfloat16), w2_ref[0, lo:hi, :],
                          preferred_element_type=jnp.float32)
    ff = ff + b2_ref[0]

    x = _layernorm(x + ff, ln2w_ref[0], ln2b_ref[0])
    resid_ref[...] = x

    @pl.when(layer == pl.num_programs(1) - 1)
    def _():
        o_ref[...] = x.reshape(bt, s, hidden).astype(o_ref.dtype)


def encoder_stack(x, params, *, num_heads, batch_tile=None):
    B, S, H = x.shape
    ff_chunk = min(4 * H, FF_CHUNK)
    cap = _vmem_capacity_bytes()
    bt = batch_tile if batch_tile is not None else _pick_batch_tile(B, S, H, ff_chunk, cap)
    assert B % bt == 0, "batch must be divisible by batch_tile"
    nb = B // bt
    L = params[0].shape[0]

    act_spec = pl.BlockSpec((bt, S, H), lambda b, l: (b, 0, 0))
    w_specs = [pl.BlockSpec((1,) + p.shape[1:], lambda b, l: (l, 0, 0)) for p in params]

    return pl.pallas_call(
        functools.partial(encoder_stack_kernel, num_heads=num_heads, ff_chunk=ff_chunk),
        out_shape=jax.ShapeDtypeStruct((B, S, H), jnp.bfloat16),
        grid=(nb, L),
        in_specs=[act_spec] + w_specs,
        out_specs=pl.BlockSpec((bt, S, H), lambda b, l: (b, 0, 0)),
        scratch_shapes=[pltpu.VMEM((bt * S, H), jnp.float32)],
        compiler_params=pltpu.CompilerParams(
            dimension_semantics=("parallel", "arbitrary"),
            vmem_limit_bytes=_encoder_vmem_limit(bt, S, H, ff_chunk, cap)),
    )(x, *params)


# ---------------------------------------------------------------------------
# Pallas kernel: output projection + cross-entropy, fused mask-weighted
# reduction.  Output is a single resident lane-dense (1, 128) accumulator:
# lane 0 = sum(mask * nll), lane 1 = sum(mask).
# ---------------------------------------------------------------------------
def out_ce_kernel(x_ref, w_ref, b_ref, tgt_ref, wgt_ref, o_ref, *, num_classes):
    @pl.when(pl.program_id(0) == 0)
    def _():
        o_ref[...] = jnp.zeros_like(o_ref)

    x = x_ref[...].astype(jnp.bfloat16)
    logits = jnp.dot(x, w_ref[...], preferred_element_type=jnp.float32) + b_ref[...]
    nt, vp = logits.shape
    class_ids = jax.lax.broadcasted_iota(jnp.int32, (nt, vp), 1)
    valid = class_ids < num_classes
    masked = jnp.where(valid, logits, jnp.float32(-1e30))
    mx = jnp.max(masked, axis=-1, keepdims=True)
    lse = mx + jnp.log(jnp.sum(jnp.exp(masked - mx), axis=-1, keepdims=True))
    picked = jnp.sum(jnp.where(class_ids == tgt_ref[...], logits, 0.0),
                     axis=-1, keepdims=True)
    nll = lse - picked                                   # (nt, 1)
    wgt = wgt_ref[...]                                   # (nt, 1)
    num = jnp.sum(nll * wgt, keepdims=True)              # (1, 1)
    den = jnp.sum(wgt, keepdims=True)                    # (1, 1)
    lane = jax.lax.broadcasted_iota(jnp.int32, o_ref.shape, 1)
    part = jnp.where(lane == 0, num, 0.0) + jnp.where(lane == 1, den, 0.0)
    o_ref[...] = o_ref[...] + part


def out_nll_sums(x, w, b, tgt, wgt, *, num_classes, row_tile=512):
    # TODO(synk): for very large node vocabularies the class dim should also be
    #             tiled; here the whole (H, vp) projection block stays resident.
    n, h = x.shape
    vp = _round_up(num_classes, 128)                     # lane-dense class dim
    if w.shape[1] != vp:
        w = jnp.pad(w, ((0, 0), (0, vp - w.shape[1])))
    if b.shape[1] != vp:
        b = jnp.pad(b, ((0, 0), (0, vp - b.shape[1])))

    n_pad = _round_up(n, 8)
    if n_pad <= row_tile:
        row_tile = n_pad
    else:
        row_tile = _round_up(row_tile, 8)
        n_pad = _round_up(n, row_tile)

    tgt2 = tgt.reshape(-1, 1).astype(jnp.int32)
    wgt2 = wgt.reshape(-1, 1).astype(jnp.float32)
    if n_pad != n:
        x = jnp.pad(x, ((0, n_pad - n), (0, 0)))
        tgt2 = jnp.pad(tgt2, ((0, n_pad - n), (0, 0)))
        wgt2 = jnp.pad(wgt2, ((0, n_pad - n), (0, 0)))   # weight 0 -> no contribution

    sums = pl.pallas_call(
        functools.partial(out_ce_kernel, num_classes=num_classes),
        out_shape=jax.ShapeDtypeStruct((1, 128), jnp.float32),
        grid=(n_pad // row_tile,),
        in_specs=[pl.BlockSpec((row_tile, h), lambda i: (i, 0)),
                  pl.BlockSpec((h, vp), lambda i: (0, 0)),
                  pl.BlockSpec((1, vp), lambda i: (0, 0)),
                  pl.BlockSpec((row_tile, 1), lambda i: (i, 0)),
                  pl.BlockSpec((row_tile, 1), lambda i: (i, 0))],
        out_specs=pl.BlockSpec((1, 128), lambda i: (0, 0)),
        compiler_params=pltpu.CompilerParams(dimension_semantics=("arbitrary",)),
    )(x, w, b, tgt2, wgt2)
    return sums[0, 0], sums[0, 1]


# ---------------------------------------------------------------------------
# Parameter init (deterministic, synthetic) — per-layer stacked, bf16 weights
# ---------------------------------------------------------------------------
def make_encoder_params(key, H, L):
    ks = jax.random.split(key, 6)
    std = 0.02
    f32, bf16 = jnp.float32, jnp.bfloat16

    def w(k, shape):
        return (jax.random.normal(k, shape, f32) * std).astype(bf16)

    wq, wk, wv, wo = (w(ks[i], (L, H, H)) for i in range(4))
    w1 = w(ks[4], (L, H, 4 * H))
    w2 = w(ks[5], (L, 4 * H, H))
    zH = jnp.zeros((L, 1, H), f32)
    oH = jnp.ones((L, 1, H), f32)
    b1 = jnp.zeros((L, 1, 4 * H), f32)
    #      wq  bq  wk  bk  wv  bv  wo  bo  ln1w ln1b w1  b1  w2  b2  ln2w ln2b
    return (wq, zH, wk, zH, wv, zH, wo, zH, oH,  zH,  w1, b1, w2, zH, oH,  zH)


# ---------------------------------------------------------------------------
# NodeBERT forward: tokenize+mask -> fused transformer -> fused out+CE -> loss
# ---------------------------------------------------------------------------
def node_bert_loss(sequences, mask, tok_emb, pos_emb, enc_params,
                   w_out, b_out, mask_token, *, num_classes):
    S, B = sequences.shape
    H = tok_emb.shape[1]

    # tokenizer: replace masked positions with MASK token, embed, add positions
    # TODO(synk): NodeTokenizer internals (special tokens / CLS handling) are not
    #             in the provided source; approximated as token + position emb.
    masked_ids = jnp.where(mask, mask_token, sequences)            # (S, B)
    src = tok_emb[masked_ids] + pos_emb[:, None, :]                # (S, B, H)
    x = jnp.transpose(src, (1, 0, 2)).astype(jnp.bfloat16)         # (B, S, H) bf16

    x = encoder_stack(x, enc_params, num_heads=H // HEAD_DIM)      # (B, S, H) bf16

    x2d = x.reshape(B * S, H)
    tgt = jnp.transpose(sequences).reshape(-1).astype(jnp.int32)   # (B*S,)
    wgt = jnp.transpose(mask).reshape(-1).astype(jnp.float32)      # (B*S,)

    num, den = out_nll_sums(x2d, w_out, b_out, tgt, wgt, num_classes=num_classes)
    # CrossEntropyLoss(mean) over masked positions == mask-weighted mean of NLL
    return num / den


if __name__ == "__main__":
    # small, deterministic configuration (hidden must be a multiple of 64)
    num_nodes, num_rels = 20, 4
    hidden, n_layers = 128, 2
    S, B = 8, 2
    mask_rate = 0.15

    MASK = num_nodes + num_rels        # output classes == tokenizer.MASK id
    vocab = MASK + 1                   # embeddings include the MASK token

    key = jax.random.PRNGKey(0)
    k_seq, k_mask, k_emb, k_pos, k_enc, k_out = jax.random.split(key, 6)

    sequences = jax.random.randint(k_seq, (S, B), 0, num_nodes, dtype=jnp.int32)
    mask = jax.random.uniform(k_mask, (S, B)) < mask_rate
    mask = mask.at[0, 0].set(True)     # guarantee at least one prediction target

    tok_emb = jax.random.normal(k_emb, (vocab, hidden), jnp.float32) * 0.02
    pos_emb = jax.random.normal(k_pos, (S, hidden), jnp.float32) * 0.02

    enc_params = make_encoder_params(k_enc, hidden, n_layers)

    w_out = (jax.random.normal(k_out, (hidden, MASK), jnp.float32) * 0.02
             ).astype(jnp.bfloat16)
    b_out = jnp.zeros((1, MASK), jnp.float32)

    loss_fn = jax.jit(functools.partial(node_bert_loss, num_classes=MASK))
    loss = loss_fn(sequences, mask, tok_emb, pos_emb, enc_params,
                   w_out, b_out, jnp.int32(MASK))
    loss = jax.block_until_ready(loss)
    assert bool(jnp.isfinite(loss)), f"non-finite loss: {loss}"
    print("KERNEL_OK")
</pallas_src>

<mosaic_0001>
module attributes {stable_mosaic.version = 11 : i64} {
  func.func @encoder_stack_kernel(%arg0: i32, %arg1: i32, %arg2: memref<1x8x128xbf16, #tpu.memory_space<vmem>>, %arg3: memref<1x128x128xbf16, #tpu.memory_space<vmem>>, %arg4: memref<1x1x128xf32, #tpu.memory_space<vmem>>, %arg5: memref<1x128x128xbf16, #tpu.memory_space<vmem>>, %arg6: memref<1x1x128xf32, #tpu.memory_space<vmem>>, %arg7: memref<1x128x128xbf16, #tpu.memory_space<vmem>>, %arg8: memref<1x1x128xf32, #tpu.memory_space<vmem>>, %arg9: memref<1x128x128xbf16, #tpu.memory_space<vmem>>, %arg10: memref<1x1x128xf32, #tpu.memory_space<vmem>>, %arg11: memref<1x1x128xf32, #tpu.memory_space<vmem>>, %arg12: memref<1x1x128xf32, #tpu.memory_space<vmem>>, %arg13: memref<1x128x512xbf16, #tpu.memory_space<vmem>>, %arg14: memref<1x1x512xf32, #tpu.memory_space<vmem>>, %arg15: memref<1x512x128xbf16, #tpu.memory_space<vmem>>, %arg16: memref<1x1x128xf32, #tpu.memory_space<vmem>>, %arg17: memref<1x1x128xf32, #tpu.memory_space<vmem>>, %arg18: memref<1x1x128xf32, #tpu.memory_space<vmem>>, %arg19: memref<1x8x128xbf16, #tpu.memory_space<vmem>>, %arg20: memref<8x128xf32, #tpu.memory_space<vmem>>) attributes {dimension_semantics = [#tpu.dimension_semantics<parallel>, #tpu.dimension_semantics<arbitrary>], iteration_bounds = array<i64: 2, 2>, scalar_prefetch = 0 : i64, scratch_operands = 1 : i64, tpu.core_type = #tpu.core_type<tc>, window_params = [{transform_indices = @transform_0, window_bounds = array<i64: 1, 8, 128>}, {transform_indices = @transform_1, window_bounds = array<i64: 1, 128, 128>}, {transform_indices = @transform_2, window_bounds = array<i64: 1, 1, 128>}, {transform_indices = @transform_3, window_bounds = array<i64: 1, 128, 128>}, {transform_indices = @transform_4, window_bounds = array<i64: 1, 1, 128>}, {transform_indices = @transform_5, window_bounds = array<i64: 1, 128, 128>}, {transform_indices = @transform_6, window_bounds = array<i64: 1, 1, 128>}, {transform_indices = @transform_7, window_bounds = array<i64: 1, 128, 128>}, {transform_indices = @transform_8, window_bounds = array<i64: 1, 1, 128>}, {transform_indices = @transform_9, window_bounds = array<i64: 1, 1, 128>}, {transform_indices = @transform_10, window_bounds = array<i64: 1, 1, 128>}, {transform_indices = @transform_11, window_bounds = array<i64: 1, 128, 512>}, {transform_indices = @transform_12, window_bounds = array<i64: 1, 1, 512>}, {transform_indices = @transform_13, window_bounds = array<i64: 1, 512, 128>}, {transform_indices = @transform_14, window_bounds = array<i64: 1, 1, 128>}, {transform_indices = @transform_15, window_bounds = array<i64: 1, 1, 128>}, {transform_indices = @transform_16, window_bounds = array<i64: 1, 1, 128>}, {transform_indices = @transform_17, window_bounds = array<i64: 1, 8, 128>}]} {
    %c0_i32 = arith.constant 0 : i32
    %0 = arith.cmpi eq, %arg1, %c0_i32 : i32
    %1 = arith.extui %0 : i1 to i32
    %c0_i32_0 = arith.constant 0 : i32
    %2 = arith.cmpi ne, %1, %c0_i32_0 : i32
    scf.if %2 {
      %c0_82 = arith.constant 0 : index
      %c0_83 = arith.constant 0 : index
      %c0_84 = arith.constant 0 : index
      %166 = vector.load %arg2[%c0_82, %c0_83, %c0_84] : memref<1x8x128xbf16, #tpu.memory_space<vmem>>, vector<1x8x128xbf16>
      %167 = vector.shape_cast %166 : vector<1x8x128xbf16> to vector<8x128xbf16>
      %168 = arith.extf %167 : vector<8x128xbf16> to vector<8x128xf32>
      %c0_85 = arith.constant 0 : index
      %c0_86 = arith.constant 0 : index
      %169 = vector.load %arg20[%c0_85, %c0_86] : memref<8x128xf32, #tpu.memory_space<vmem>>, vector<8x128xf32>
      tpu.vector_store %arg20[%c0_85, %c0_86], %168 {strides = array<i32>} : memref<8x128xf32, #tpu.memory_space<vmem>>, vector<8x128xf32>,
    } else {
    }
    %c0 = arith.constant 0 : index
    %c0_1 = arith.constant 0 : index
    %3 = vector.load %arg20[%c0, %c0_1] : memref<8x128xf32, #tpu.memory_space<vmem>>, vector<8x128xf32>
    %4 = arith.truncf %3 : vector<8x128xf32> to vector<8x128xbf16>
    %c0_2 = arith.constant 0 : index
    %c0_3 = arith.constant 0 : index
    %c0_4 = arith.constant 0 : index
    %5 = vector.load %arg3[%c0_2, %c0_3, %c0_4] : memref<1x128x128xbf16, #tpu.memory_space<vmem>>, vector<1x128x128xbf16>
    %6 = vector.shape_cast %5 : vector<1x128x128xbf16> to vector<128x128xbf16>
    %cst = arith.constant dense<0.000000e+00> : vector<8x128xf32>
    %7 = tpu.matmul %4, %6, %cst {dimension_numbers = #tpu.dot_dimension_numbers<[1], [0], [0], [1], [0, 0, 1, 1], [], []>} : vector<8x128xbf16>, vector<128x128xbf16>, vector<8x128xf32> -> vector<8x128xf32>
    %c0_5 = arith.constant 0 : index
    %c0_6 = arith.constant 0 : index
    %c0_7 = arith.constant 0 : index
    %8 = vector.load %arg4[%c0_5, %c0_6, %c0_7] : memref<1x1x128xf32, #tpu.memory_space<vmem>>, vector<1x1x128xf32>
    %9 = vector.shape_cast %8 : vector<1x1x128xf32> to vector<1x128xf32>
    %10 = vector.broadcast %9 : vector<1x128xf32> to vector<8x128xf32>
    %11 = arith.addf %7, %10 : vector<8x128xf32>
    %cst_8 = arith.constant 1.250000e-01 : f32
    %12 = vector.broadcast %cst_8 : f32 to vector<8x128xf32>
    %13 = arith.mulf %11, %12 : vector<8x128xf32>
    %c0_9 = arith.constant 0 : index
    %c0_10 = arith.constant 0 : index
    %c0_11 = arith.constant 0 : index
    %14 = vector.load %arg5[%c0_9, %c0_10, %c0_11] : memref<1x128x128xbf16, #tpu.memory_space<vmem>>, vector<1x128x128xbf16>
    %15 = vector.shape_cast %14 : vector<1x128x128xbf16> to vector<128x128xbf16>
    %cst_12 = arith.constant dense<0.000000e+00> : vector<8x128xf32>
    %16 = tpu.matmul %4, %15, %cst_12 {dimension_numbers = #tpu.dot_dimension_numbers<[1], [0], [0], [1], [0, 0, 1, 1], [], []>} : vector<8x128xbf16>, vector<128x128xbf16>, vector<8x128xf32> -> vector<8x128xf32>
    %c0_13 = arith.constant 0 : index
    %c0_14 = arith.constant 0 : index
    %c0_15 = arith.constant 0 : index
    %17 = vector.load %arg6[%c0_13, %c0_14, %c0_15] : memref<1x1x128xf32, #tpu.memory_space<vmem>>, vector<1x1x128xf32>
    %18 = vector.shape_cast %17 : vector<1x1x128xf32> to vector<1x128xf32>
    %19 = vector.broadcast %18 : vector<1x128xf32> to vector<8x128xf32>
    %20 = arith.addf %16, %19 : vector<8x128xf32>
    %c0_16 = arith.constant 0 : index
    %c0_17 = arith.constant 0 : index
    %c0_18 = arith.constant 0 : index
    %21 = vector.load %arg7[%c0_16, %c0_17, %c0_18] : memref<1x128x128xbf16, #tpu.memory_space<vmem>>, vector<1x128x128xbf16>
    %22 = vector.shape_cast %21 : vector<1x128x128xbf16> to vector<128x128xbf16>
    %cst_19 = arith.constant dense<0.000000e+00> : vector<8x128xf32>
    %23 = tpu.matmul %4, %22, %cst_19 {dimension_numbers = #tpu.dot_dimension_numbers<[1], [0], [0], [1], [0, 0, 1, 1], [], []>} : vector<8x128xbf16>, vector<128x128xbf16>, vector<8x128xf32> -> vector<8x128xf32>
    %c0_20 = arith.constant 0 : index
    %c0_21 = arith.constant 0 : index
    %c0_22 = arith.constant 0 : index
    %24 = vector.load %arg8[%c0_20, %c0_21, %c0_22] : memref<1x1x128xf32, #tpu.memory_space<vmem>>, vector<1x1x128xf32>
    %25 = vector.shape_cast %24 : vector<1x1x128xf32> to vector<1x128xf32>
    %26 = vector.broadcast %25 : vector<1x128xf32> to vector<8x128xf32>
    %27 = arith.addf %23, %26 : vector<8x128xf32>
    %28 = arith.truncf %13 : vector<8x128xf32> to vector<8x128xbf16>
    %29 = vector.shape_cast %28 : vector<8x128xbf16> to vector<1x8x128xbf16>
    %30 = arith.truncf %20 : vector<8x128xf32> to vector<8x128xbf16>
    %31 = vector.shape_cast %30 : vector<8x128xbf16> to vector<1x8x128xbf16>
    %32 = arith.truncf %27 : vector<8x128xf32> to vector<8x128xbf16>
    %33 = vector.shape_cast %32 : vector<8x128xbf16> to vector<1x8x128xbf16>
    %34 = vector.extract_strided_slice %29 {offsets = [0, 0, 0], sizes = [1, 8, 64], strides = [1, 1, 1]} : vector<1x8x128xbf16> to vector<1x8x64xbf16>
    %35 = vector.extract_strided_slice %31 {offsets = [0, 0, 0], sizes = [1, 8, 64], strides = [1, 1, 1]} : vector<1x8x128xbf16> to vector<1x8x64xbf16>
    "tpu.trace_start"() <{level = 10 : i32, message = "bqd,bkd->bqk"}> : () -> ()
    %cst_23 = arith.constant dense<0.000000e+00> : vector<1x8x8xf32>
    %36 = tpu.matmul %34, %35, %cst_23 {dimension_numbers = #tpu.dot_dimension_numbers<[2], [2], [1], [1], [0, 0, 0, 1, 1, 1], [0], [0]>} : vector<1x8x64xbf16>, vector<1x8x64xbf16>, vector<1x8x8xf32> -> vector<1x8x8xf32>
    "tpu.trace_stop"() : () -> ()
    %cst_24 = arith.constant dense<0xFF800000> : vector<1x8xf32>
    %37 = vector.multi_reduction <maximumf>, %36, %cst_24 [2] : vector<1x8x8xf32> to vector<1x8xf32>
    %38 = vector.shape_cast %37 : vector<1x8xf32> to vector<1x8x1xf32>
    %39 = vector.broadcast %38 : vector<1x8x1xf32> to vector<1x8x8xf32>
    %40 = arith.subf %36, %39 : vector<1x8x8xf32>
    %41 = math.exp %40 : vector<1x8x8xf32>
    %cst_25 = arith.constant dense<0.000000e+00> : vector<1x8xf32>
    %42 = vector.multi_reduction <add>, %41, %cst_25 [2] : vector<1x8x8xf32> to vector<1x8xf32>
    %43 = vector.shape_cast %42 : vector<1x8xf32> to vector<1x8x1xf32>
    %44 = tpu.reciprocal %43 {approx = true} : vector<1x8x1xf32> -> vector<1x8x1xf32>
    %45 = vector.broadcast %44 : vector<1x8x1xf32> to vector<1x8x8xf32>
    %46 = arith.mulf %41, %45 : vector<1x8x8xf32>
    %47 = arith.truncf %46 : vector<1x8x8xf32> to vector<1x8x8xbf16>
    %48 = vector.extract_strided_slice %33 {offsets = [0, 0, 0], sizes = [1, 8, 64], strides = [1, 1, 1]} : vector<1x8x128xbf16> to vector<1x8x64xbf16>
    "tpu.trace_start"() <{level = 10 : i32, message = "bqk,bkd->bqd"}> : () -> ()
    %cst_26 = arith.constant dense<0.000000e+00> : vector<1x8x64xf32>
    %49 = tpu.matmul %47, %48, %cst_26 {dimension_numbers = #tpu.dot_dimension_numbers<[2], [1], [1], [2], [0, 0, 0, 1, 1, 2], [0], [0]>} : vector<1x8x8xbf16>, vector<1x8x64xbf16>, vector<1x8x64xf32> -> vector<1x8x64xf32>
    "tpu.trace_stop"() : () -> ()
    %50 = arith.truncf %49 : vector<1x8x64xf32> to vector<1x8x64xbf16>
    %51 = vector.extract_strided_slice %29 {offsets = [0, 0, 64], sizes = [1, 8, 64], strides = [1, 1, 1]} : vector<1x8x128xbf16> to vector<1x8x64xbf16>
    %52 = vector.extract_strided_slice %31 {offsets = [0, 0, 64], sizes = [1, 8, 64], strides = [1, 1, 1]} : vector<1x8x128xbf16> to vector<1x8x64xbf16>
    "tpu.trace_start"() <{level = 10 : i32, message = "bqd,bkd->bqk"}> : () -> ()
    %cst_27 = arith.constant dense<0.000000e+00> : vector<1x8x8xf32>
    %53 = tpu.matmul %51, %52, %cst_27 {dimension_numbers = #tpu.dot_dimension_numbers<[2], [2], [1], [1], [0, 0, 0, 1, 1, 1], [0], [0]>} : vector<1x8x64xbf16>, vector<1x8x64xbf16>, vector<1x8x8xf32> -> vector<1x8x8xf32>
    "tpu.trace_stop"() : () -> ()
    %cst_28 = arith.constant dense<0xFF800000> : vector<1x8xf32>
    %54 = vector.multi_reduction <maximumf>, %53, %cst_28 [2] : vector<1x8x8xf32> to vector<1x8xf32>
    %55 = vector.shape_cast %54 : vector<1x8xf32> to vector<1x8x1xf32>
    %56 = vector.broadcast %55 : vector<1x8x1xf32> to vector<1x8x8xf32>
    %57 = arith.subf %53, %56 : vector<1x8x8xf32>
    %58 = math.exp %57 : vector<1x8x8xf32>
    %cst_29 = arith.constant dense<0.000000e+00> : vector<1x8xf32>
    %59 = vector.multi_reduction <add>, %58, %cst_29 [2] : vector<1x8x8xf32> to vector<1x8xf32>
    %60 = vector.shape_cast %59 : vector<1x8xf32> to vector<1x8x1xf32>
    %61 = tpu.reciprocal %60 {approx = true} : vector<1x8x1xf32> -> vector<1x8x1xf32>
    %62 = vector.broadcast %61 : vector<1x8x1xf32> to vector<1x8x8xf32>
    %63 = arith.mulf %58, %62 : vector<1x8x8xf32>
    %64 = arith.truncf %63 : vector<1x8x8xf32> to vector<1x8x8xbf16>
    %65 = vector.extract_strided_slice %33 {offsets = [0, 0, 64], sizes = [1, 8, 64], strides = [1, 1, 1]} : vector<1x8x128xbf16> to vector<1x8x64xbf16>
    "tpu.trace_start"() <{level = 10 : i32, message = "bqk,bkd->bqd"}> : () -> ()
    %cst_30 = arith.constant dense<0.000000e+00> : vector<1x8x64xf32>
    %66 = tpu.matmul %64, %65, %cst_30 {dimension_numbers = #tpu.dot_dimension_numbers<[2], [1], [1], [2], [0, 0, 0, 1, 1, 2], [0], [0]>} : vector<1x8x8xbf16>, vector<1x8x64xbf16>, vector<1x8x64xf32> -> vector<1x8x64xf32>
    "tpu.trace_stop"() : () -> ()
    %67 = arith.truncf %66 : vector<1x8x64xf32> to vector<1x8x64xbf16>
    %68 = tpu.concatenate %50, %67 in 2 : vector<1x8x64xbf16>, vector<1x8x64xbf16> -> vector<1x8x128xbf16>
    %69 = vector.shape_cast %68 : vector<1x8x128xbf16> to vector<8x128xbf16>
    %c0_31 = arith.constant 0 : index
    %c0_32 = arith.constant 0 : index
    %c0_33 = arith.constant 0 : index
    %70 = vector.load %arg9[%c0_31, %c0_32, %c0_33] : memref<1x128x128xbf16, #tpu.memory_space<vmem>>, vector<1x128x128xbf16>
    %71 = vector.shape_cast %70 : vector<1x128x128xbf16> to vector<128x128xbf16>
    %cst_34 = arith.constant dense<0.000000e+00> : vector<8x128xf32>
    %72 = tpu.matmul %69, %71, %cst_34 {dimension_numbers = #tpu.dot_dimension_numbers<[1], [0], [0], [1], [0, 0, 1, 1], [], []>} : vector<8x128xbf16>, vector<128x128xbf16>, vector<8x128xf32> -> vector<8x128xf32>
    %c0_35 = arith.constant 0 : index
    %c0_36 = arith.constant 0 : index
    %c0_37 = arith.constant 0 : index
    %73 = vector.load %arg10[%c0_35, %c0_36, %c0_37] : memref<1x1x128xf32, #tpu.memory_space<vmem>>, vector<1x1x128xf32>
    %74 = vector.shape_cast %73 : vector<1x1x128xf32> to vector<1x128xf32>
    %75 = vector.broadcast %74 : vector<1x128xf32> to vector<8x128xf32>
    %76 = arith.addf %72, %75 : vector<8x128xf32>
    %77 = arith.addf %3, %76 : vector<8x128xf32>
    %c0_38 = arith.constant 0 : index
    %c0_39 = arith.constant 0 : index
    %c0_40 = arith.constant 0 : index
    %78 = vector.load %arg11[%c0_38, %c0_39, %c0_40] : memref<1x1x128xf32, #tpu.memory_space<vmem>>, vector<1x1x128xf32>
    %79 = vector.shape_cast %78 : vector<1x1x128xf32> to vector<1x128xf32>
    %c0_41 = arith.constant 0 : index
    %c0_42 = arith.constant 0 : index
    %c0_43 = arith.constant 0 : index
    %80 = vector.load %arg12[%c0_41, %c0_42, %c0_43] : memref<1x1x128xf32, #tpu.memory_space<vmem>>, vector<1x1x128xf32>
    %81 = vector.shape_cast %80 : vector<1x1x128xf32> to vector<1x128xf32>
    %cst_44 = arith.constant dense<0.000000e+00> : vector<8xf32>
    %82 = vector.multi_reduction <add>, %77, %cst_44 [1] : vector<8x128xf32> to vector<8xf32>
    %83 = vector.shape_cast %82 : vector<8xf32> to vector<8x1xf32>
    %cst_45 = arith.constant 1.280000e+02 : f32
    %84 = vector.broadcast %cst_45 : f32 to vector<8x1xf32>
    %85 = arith.divf %83, %84 : vector<8x1xf32>
    %86 = vector.broadcast %85 : vector<8x1xf32> to vector<8x128xf32>
    %87 = arith.subf %77, %86 : vector<8x128xf32>
    %88 = arith.mulf %87, %87 : vector<8x128xf32>
    %cst_46 = arith.constant dense<0.000000e+00> : vector<8xf32>
    %89 = vector.multi_reduction <add>, %88, %cst_46 [1] : vector<8x128xf32> to vector<8xf32>
    %90 = vector.shape_cast %89 : vector<8xf32> to vector<8x1xf32>
    %cst_47 = arith.constant 1.280000e+02 : f32
    %91 = vector.broadcast %cst_47 : f32 to vector<8x1xf32>
    %92 = arith.divf %90, %91 : vector<8x1xf32>
    %93 = vector.broadcast %85 : vector<8x1xf32> to vector<8x128xf32>
    %94 = arith.subf %77, %93 : vector<8x128xf32>
    %cst_48 = arith.constant 9.99999974E-6 : f32
    %95 = vector.broadcast %cst_48 : f32 to vector<8x1xf32>
    %96 = arith.addf %92, %95 : vector<8x1xf32>
    %97 = math.rsqrt %96 : vector<8x1xf32>
    %98 = vector.broadcast %97 : vector<8x1xf32> to vector<8x128xf32>
    %99 = arith.mulf %94, %98 : vector<8x128xf32>
    %100 = vector.broadcast %79 : vector<1x128xf32> to vector<8x128xf32>
    %101 = arith.mulf %99, %100 : vector<8x128xf32>
    %102 = vector.broadcast %81 : vector<1x128xf32> to vector<8x128xf32>
    %103 = arith.addf %101, %102 : vector<8x128xf32>
    %104 = arith.truncf %103 : vector<8x128xf32> to vector<8x128xbf16>
    %cst_49 = arith.constant 0.000000e+00 : f32
    %105 = vector.broadcast %cst_49 : f32 to vector<8x128xf32>
    %c0_50 = arith.constant 0 : index
    %c0_51 = arith.constant 0 : index
    %c0_52 = arith.constant 0 : index
    %106 = vector.load %arg13[%c0_50, %c0_51, %c0_52] : memref<1x128x512xbf16, #tpu.memory_space<vmem>>, vector<1x128x512xbf16>
    %107 = vector.shape_cast %106 : vector<1x128x512xbf16> to vector<128x512xbf16>
    %cst_53 = arith.constant dense<0.000000e+00> : vector<8x512xf32>
    %108 = tpu.matmul %104, %107, %cst_53 {dimension_numbers = #tpu.dot_dimension_numbers<[1], [0], [0], [1], [0, 0, 1, 1], [], []>} : vector<8x128xbf16>, vector<128x512xbf16>, vector<8x512xf32> -> vector<8x512xf32>
    %c0_54 = arith.constant 0 : index
    %c0_55 = arith.constant 0 : index
    %c0_56 = arith.constant 0 : index
    %109 = vector.load %arg14[%c0_54, %c0_55, %c0_56] : memref<1x1x512xf32, #tpu.memory_space<vmem>>, vector<1x1x512xf32>
    %110 = vector.shape_cast %109 : vector<1x1x512xf32> to vector<1x512xf32>
    %111 = vector.broadcast %110 : vector<1x512xf32> to vector<8x512xf32>
    %112 = arith.addf %108, %111 : vector<8x512xf32>
    %cst_57 = arith.constant 5.000000e-01 : f32
    %113 = vector.broadcast %cst_57 : f32 to vector<8x512xf32>
    %114 = arith.mulf %113, %112 : vector<8x512xf32>
    %cst_58 = arith.constant 4.471500e-02 : f32
    %115 = vector.broadcast %cst_58 : f32 to vector<8x512xf32>
    %116 = arith.mulf %115, %112 : vector<8x512xf32>
    %117 = arith.mulf %116, %112 : vector<8x512xf32>
    %118 = arith.mulf %117, %112 : vector<8x512xf32>
    %119 = arith.addf %112, %118 : vector<8x512xf32>
    %cst_59 = arith.constant 0.797884583 : f32
    %120 = vector.broadcast %cst_59 : f32 to vector<8x512xf32>
    %121 = arith.mulf %120, %119 : vector<8x512xf32>
    %122 = math.tanh %121 : vector<8x512xf32>
    %cst_60 = arith.constant 1.000000e+00 : f32
    %123 = vector.broadcast %cst_60 : f32 to vector<8x512xf32>
    %124 = arith.addf %123, %122 : vector<8x512xf32>
    %125 = arith.mulf %114, %124 : vector<8x512xf32>
    %126 = arith.truncf %125 : vector<8x512xf32> to vector<8x512xbf16>
    %c0_61 = arith.constant 0 : index
    %c0_62 = arith.constant 0 : index
    %c0_63 = arith.constant 0 : index
    %127 = vector.load %arg15[%c0_61, %c0_62, %c0_63] : memref<1x512x128xbf16, #tpu.memory_space<vmem>>, vector<1x512x128xbf16>
    %128 = vector.shape_cast %127 : vector<1x512x128xbf16> to vector<512x128xbf16>
    %cst_64 = arith.constant dense<0.000000e+00> : vector<8x128xf32>
    %129 = tpu.matmul %126, %128, %cst_64 {dimension_numbers = #tpu.dot_dimension_numbers<[1], [0], [0], [1], [0, 0, 1, 1], [], []>} : vector<8x512xbf16>, vector<512x128xbf16>, vector<8x128xf32> -> vector<8x128xf32>
    %130 = arith.addf %105, %129 : vector<8x128xf32>
    %c0_65 = arith.constant 0 : index
    %c0_66 = arith.constant 0 : index
    %c0_67 = arith.constant 0 : index
    %131 = vector.load %arg16[%c0_65, %c0_66, %c0_67] : memref<1x1x128xf32, #tpu.memory_space<vmem>>, vector<1x1x128xf32>
    %132 = vector.shape_cast %131 : vector<1x1x128xf32> to vector<1x128xf32>
    %133 = vector.broadcast %132 : vector<1x128xf32> to vector<8x128xf32>
    %134 = arith.addf %130, %133 : vector<8x128xf32>
    %135 = arith.addf %103, %134 : vector<8x128xf32>
    %c0_68 = arith.constant 0 : index
    %c0_69 = arith.constant 0 : index
    %c0_70 = arith.constant 0 : index
    %136 = vector.load %arg17[%c0_68, %c0_69, %c0_70] : memref<1x1x128xf32, #tpu.memory_space<vmem>>, vector<1x1x128xf32>
    %137 = vector.shape_cast %136 : vector<1x1x128xf32> to vector<1x128xf32>
    %c0_71 = arith.constant 0 : index
    %c0_72 = arith.constant 0 : index
    %c0_73 = arith.constant 0 : index
    %138 = vector.load %arg18[%c0_71, %c0_72, %c0_73] : memref<1x1x128xf32, #tpu.memory_space<vmem>>, vector<1x1x128xf32>
    %139 = vector.shape_cast %138 : vector<1x1x128xf32> to vector<1x128xf32>
    %cst_74 = arith.constant dense<0.000000e+00> : vector<8xf32>
    %140 = vector.multi_reduction <add>, %135, %cst_74 [1] : vector<8x128xf32> to vector<8xf32>
    %141 = vector.shape_cast %140 : vector<8xf32> to vector<8x1xf32>
    %cst_75 = arith.constant 1.280000e+02 : f32
    %142 = vector.broadcast %cst_75 : f32 to vector<8x1xf32>
    %143 = arith.divf %141, %142 : vector<8x1xf32>
    %144 = vector.broadcast %143 : vector<8x1xf32> to vector<8x128xf32>
    %145 = arith.subf %135, %144 : vector<8x128xf32>
    %146 = arith.mulf %145, %145 : vector<8x128xf32>
    %cst_76 = arith.constant dense<0.000000e+00> : vector<8xf32>
    %147 = vector.multi_reduction <add>, %146, %cst_76 [1] : vector<8x128xf32> to vector<8xf32>
    %148 = vector.shape_cast %147 : vector<8xf32> to vector<8x1xf32>
    %cst_77 = arith.constant 1.280000e+02 : f32
    %149 = vector.broadcast %cst_77 : f32 to vector<8x1xf32>
    %150 = arith.divf %148, %149 : vector<8x1xf32>
    %151 = vector.broadcast %143 : vector<8x1xf32> to vector<8x128xf32>
    %152 = arith.subf %135, %151 : vector<8x128xf32>
    %cst_78 = arith.constant 9.99999974E-6 : f32
    %153 = vector.broadcast %cst_78 : f32 to vector<8x1xf32>
    %154 = arith.addf %150, %153 : vector<8x1xf32>
    %155 = math.rsqrt %154 : vector<8x1xf32>
    %156 = vector.broadcast %155 : vector<8x1xf32> to vector<8x128xf32>
    %157 = arith.mulf %152, %156 : vector<8x128xf32>
    %158 = vector.broadcast %137 : vector<1x128xf32> to vector<8x128xf32>
    %159 = arith.mulf %157, %158 : vector<8x128xf32>
    %160 = vector.broadcast %139 : vector<1x128xf32> to vector<8x128xf32>
    %161 = arith.addf %159, %160 : vector<8x128xf32>
    %c0_79 = arith.constant 0 : index
    %c0_80 = arith.constant 0 : index
    %162 = vector.load %arg20[%c0_79, %c0_80] : memref<8x128xf32, #tpu.memory_space<vmem>>, vector<8x128xf32>
    tpu.vector_store %arg20[%c0_79, %c0_80], %161 {strides = array<i32>} : memref<8x128xf32, #tpu.memory_space<vmem>>, vector<8x128xf32>,
    %c1_i32 = arith.constant 1 : i32
    %163 = arith.cmpi eq, %arg1, %c1_i32 : i32
    %164 = arith.extui %163 : i1 to i32
    %c0_i32_81 = arith.constant 0 : i32
    %165 = arith.cmpi ne, %164, %c0_i32_81 : i32
    scf.if %165 {
      %166 = vector.shape_cast %161 : vector<8x128xf32> to vector<1x8x128xf32>
      %167 = arith.truncf %166 : vector<1x8x128xf32> to vector<1x8x128xbf16>
      %c0_82 = arith.constant 0 : index
      %c0_83 = arith.constant 0 : index
      %c0_84 = arith.constant 0 : index
      %168 = vector.load %arg19[%c0_82, %c0_83, %c0_84] : memref<1x8x128xbf16, #tpu.memory_space<vmem>>, vector<1x8x128xbf16>
      tpu.vector_store %arg19[%c0_82, %c0_83, %c0_84], %167 {strides = array<i32>} : memref<1x8x128xbf16, #tpu.memory_space<vmem>>, vector<1x8x128xbf16>,
    } else {
    }
    return
  }
  func.func @transform_0(%arg0: i32, %arg1: i32) -> (i32, i32, i32) {
    %c0_i32 = arith.constant 0 : i32
    %c0_i32_0 = arith.constant 0 : i32
    %c0_i32_1 = arith.constant 0 : i32
    return %arg0, %c0_i32, %c0_i32_0 : i32, i32, i32
  }
  func.func @transform_1(%arg0: i32, %arg1: i32) -> (i32, i32, i32) {
    %c0_i32 = arith.constant 0 : i32
    %c0_i32_0 = arith.constant 0 : i32
    %c0_i32_1 = arith.constant 0 : i32
    return %arg1, %c0_i32, %c0_i32_0 : i32, i32, i32
  }
  func.func @transform_2(%arg0: i32, %arg1: i32) -> (i32, i32, i32) {
    %c0_i32 = arith.constant 0 : i32
    %c0_i32_0 = arith.constant 0 : i32
    %c0_i32_1 = arith.constant 0 : i32
    return %arg1, %c0_i32, %c0_i32_0 : i32, i32, i32
  }
  func.func @transform_3(%arg0: i32, %arg1: i32) -> (i32, i32, i32) {
    %c0_i32 = arith.constant 0 : i32
    %c0_i32_0 = arith.constant 0 : i32
    %c0_i32_1 = arith.constant 0 : i32
    return %arg1, %c0_i32, %c0_i32_0 : i32, i32, i32
  }
  func.func @transform_4(%arg0: i32, %arg1: i32) -> (i32, i32, i32) {
    %c0_i32 = arith.constant 0 : i32
    %c0_i32_0 = arith.constant 0 : i32
    %c0_i32_1 = arith.constant 0 : i32
    return %arg1, %c0_i32, %c0_i32_0 : i32, i32, i32
  }
  func.func @transform_5(%arg0: i32, %arg1: i32) -> (i32, i32, i32) {
    %c0_i32 = arith.constant 0 : i32
    %c0_i32_0 = arith.constant 0 : i32
    %c0_i32_1 = arith.constant 0 : i32
    return %arg1, %c0_i32, %c0_i32_0 : i32, i32, i32
  }
  func.func @transform_6(%arg0: i32, %arg1: i32) -> (i32, i32, i32) {
    %c0_i32 = arith.constant 0 : i32
    %c0_i32_0 = arith.constant 0 : i32
    %c0_i32_1 = arith.constant 0 : i32
    return %arg1, %c0_i32, %c0_i32_0 : i32, i32, i32
  }
  func.func @transform_7(%arg0: i32, %arg1: i32) -> (i32, i32, i32) {
    %c0_i32 = arith.constant 0 : i32
    %c0_i32_0 = arith.constant 0 : i32
    %c0_i32_1 = arith.constant 0 : i32
    return %arg1, %c0_i32, %c0_i32_0 : i32, i32, i32
  }
  func.func @transform_8(%arg0: i32, %arg1: i32) -> (i32, i32, i32) {
    %c0_i32 = arith.constant 0 : i32
    %c0_i32_0 = arith.constant 0 : i32
    %c0_i32_1 = arith.constant 0 : i32
    return %arg1, %c0_i32, %c0_i32_0 : i32, i32, i32
  }
  func.func @transform_9(%arg0: i32, %arg1: i32) -> (i32, i32, i32) {
    %c0_i32 = arith.constant 0 : i32
    %c0_i32_0 = arith.constant 0 : i32
    %c0_i32_1 = arith.constant 0 : i32
    return %arg1, %c0_i32, %c0_i32_0 : i32, i32, i32
  }
  func.func @transform_10(%arg0: i32, %arg1: i32) -> (i32, i32, i32) {
    %c0_i32 = arith.constant 0 : i32
    %c0_i32_0 = arith.constant 0 : i32
    %c0_i32_1 = arith.constant 0 : i32
    return %arg1, %c0_i32, %c0_i32_0 : i32, i32, i32
  }
  func.func @transform_11(%arg0: i32, %arg1: i32) -> (i32, i32, i32) {
    %c0_i32 = arith.constant 0 : i32
    %c0_i32_0 = arith.constant 0 : i32
    %c0_i32_1 = arith.constant 0 : i32
    return %arg1, %c0_i32, %c0_i32_0 : i32, i32, i32
  }
  func.func @transform_12(%arg0: i32, %arg1: i32) -> (i32, i32, i32) {
    %c0_i32 = arith.constant 0 : i32
    %c0_i32_0 = arith.constant 0 : i32
    %c0_i32_1 = arith.constant 0 : i32
    return %arg1, %c0_i32, %c0_i32_0 : i32, i32, i32
  }
  func.func @transform_13(%arg0: i32, %arg1: i32) -> (i32, i32, i32) {
    %c0_i32 = arith.constant 0 : i32
    %c0_i32_0 = arith.constant 0 : i32
    %c0_i32_1 = arith.constant 0 : i32
    return %arg1, %c0_i32, %c0_i32_0 : i32, i32, i32
  }
  func.func @transform_14(%arg0: i32, %arg1: i32) -> (i32, i32, i32) {
    %c0_i32 = arith.constant 0 : i32
    %c0_i32_0 = arith.constant 0 : i32
    %c0_i32_1 = arith.constant 0 : i32
    return %arg1, %c0_i32, %c0_i32_0 : i32, i32, i32
  }
  func.func @transform_15(%arg0: i32, %arg1: i32) -> (i32, i32, i32) {
    %c0_i32 = arith.constant 0 : i32
    %c0_i32_0 = arith.constant 0 : i32
    %c0_i32_1 = arith.constant 0 : i32
    return %arg1, %c0_i32, %c0_i32_0 : i32, i32, i32
  }
  func.func @transform_16(%arg0: i32, %arg1: i32) -> (i32, i32, i32) {
    %c0_i32 = arith.constant 0 : i32
    %c0_i32_0 = arith.constant 0 : i32
    %c0_i32_1 = arith.constant 0 : i32
    return %arg1, %c0_i32, %c0_i32_0 : i32, i32, i32
  }
  func.func @transform_17(%arg0: i32, %arg1: i32) -> (i32, i32, i32) {
    %c0_i32 = arith.constant 0 : i32
    %c0_i32_0 = arith.constant 0 : i32
    %c0_i32_1 = arith.constant 0 : i32
    return %arg0, %c0_i32, %c0_i32_0 : i32, i32, i32
  }
}

module attributes {stable_mosaic.version = 11 : i64} {
  func.func @out_ce_kernel(%arg0: i32, %arg1: memref<16x128xbf16, #tpu.memory_space<vmem>>, %arg2: memref<128x128xbf16, #tpu.memory_space<vmem>>, %arg3: memref<1x128xf32, #tpu.memory_space<vmem>>, %arg4: memref<16x1xi32, #tpu.memory_space<vmem>>, %arg5: memref<16x1xf32, #tpu.memory_space<vmem>>, %arg6: memref<1x128xf32, #tpu.memory_space<vmem>>) attributes {dimension_semantics = [#tpu.dimension_semantics<arbitrary>], iteration_bounds = array<i64: 1>, scalar_prefetch = 0 : i64, scratch_operands = 0 : i64, tpu.core_type = #tpu.core_type<tc>, window_params = [{transform_indices = @transform_0, window_bounds = array<i64: 16, 128>}, {pipeline_mode = #tpu.pipeline_mode<synchronous>, transform_indices = @transform_1, window_bounds = array<i64: 128, 128>}, {pipeline_mode = #tpu.pipeline_mode<synchronous>, transform_indices = @transform_2, window_bounds = array<i64: 1, 128>}, {transform_indices = @transform_3, window_bounds = array<i64: 16, 1>}, {transform_indices = @transform_4, window_bounds = array<i64: 16, 1>}, {pipeline_mode = #tpu.pipeline_mode<synchronous>, transform_indices = @transform_5, window_bounds = array<i64: 1, 128>}]} {
    %c0_i32 = arith.constant 0 : i32
    %0 = arith.cmpi eq, %arg0, %c0_i32 : i32
    %1 = arith.extui %0 : i1 to i32
    %c0_i32_0 = arith.constant 0 : i32
    %2 = arith.cmpi ne, %1, %c0_i32_0 : i32
    scf.if %2 {
      %cst_24 = arith.constant 0.000000e+00 : f32
      %60 = vector.broadcast %cst_24 : f32 to vector<1x128xf32>
      %c0_25 = arith.constant 0 : index
      %c0_26 = arith.constant 0 : index
      %61 = vector.load %arg6[%c0_25, %c0_26] : memref<1x128xf32, #tpu.memory_space<vmem>>, vector<1x128xf32>
      tpu.vector_store %arg6[%c0_25, %c0_26], %60 {strides = array<i32>} : memref<1x128xf32, #tpu.memory_space<vmem>>, vector<1x128xf32>,
    } else {
    }
    %c0 = arith.constant 0 : index
    %c0_1 = arith.constant 0 : index
    %3 = vector.load %arg1[%c0, %c0_1] : memref<16x128xbf16, #tpu.memory_space<vmem>>, vector<16x128xbf16>
    %c0_2 = arith.constant 0 : index
    %c0_3 = arith.constant 0 : index
    %4 = vector.load %arg2[%c0_2, %c0_3] : memref<128x128xbf16, #tpu.memory_space<vmem>>, vector<128x128xbf16>
    %cst = arith.constant dense<0.000000e+00> : vector<16x128xf32>
    %5 = tpu.matmul %3, %4, %cst {dimension_numbers = #tpu.dot_dimension_numbers<[1], [0], [0], [1], [0, 0, 1, 1], [], []>} : vector<16x128xbf16>, vector<128x128xbf16>, vector<16x128xf32> -> vector<16x128xf32>
    %c0_4 = arith.constant 0 : index
    %c0_5 = arith.constant 0 : index
    %6 = vector.load %arg3[%c0_4, %c0_5] : memref<1x128xf32, #tpu.memory_space<vmem>>, vector<1x128xf32>
    %7 = vector.broadcast %6 : vector<1x128xf32> to vector<16x128xf32>
    %8 = arith.addf %5, %7 : vector<16x128xf32>
    %9 = tpu.iota {dimensions = array<i32: 1>} : vector<16x128xi32>
    %c24_i32 = arith.constant 24 : i32
    %10 = vector.broadcast %c24_i32 : i32 to vector<16x128xi32>
    %11 = arith.cmpi slt, %9, %10 : vector<16x128xi32>
    %cst_6 = arith.constant -1.000000e+30 : f32
    %12 = vector.broadcast %cst_6 : f32 to vector<16x128xf32>
    %13 = arith.select %11, %8, %12 : vector<16x128xi1>, vector<16x128xf32>
    %cst_7 = arith.constant dense<0xFF800000> : vector<16xf32>
    %14 = vector.multi_reduction <maximumf>, %13, %cst_7 [1] : vector<16x128xf32> to vector<16xf32>
    %15 = vector.shape_cast %14 : vector<16xf32> to vector<16x1xf32>
    %16 = vector.broadcast %15 : vector<16x1xf32> to vector<16x128xf32>
    %17 = arith.subf %13, %16 : vector<16x128xf32>
    %18 = math.exp %17 : vector<16x128xf32>
    %cst_8 = arith.constant dense<0.000000e+00> : vector<16xf32>
    %19 = vector.multi_reduction <add>, %18, %cst_8 [1] : vector<16x128xf32> to vector<16xf32>
    %20 = vector.shape_cast %19 : vector<16xf32> to vector<16x1xf32>
    %21 = math.log %20 : vector<16x1xf32>
    %22 = arith.addf %15, %21 : vector<16x1xf32>
    %c0_9 = arith.constant 0 : index
    %c0_10 = arith.constant 0 : index
    %23 = vector.load %arg4[%c0_9, %c0_10] : memref<16x1xi32, #tpu.memory_space<vmem>>, vector<16x1xi32>
    %24 = vector.broadcast %23 : vector<16x1xi32> to vector<16x128xi32>
    %25 = arith.cmpi eq, %9, %24 : vector<16x128xi32>
    %cst_11 = arith.constant 0.000000e+00 : f32
    %26 = vector.broadcast %cst_11 : f32 to vector<16x128xf32>
    %27 = arith.select %25, %8, %26 : vector<16x128xi1>, vector<16x128xf32>
    %cst_12 = arith.constant dense<0.000000e+00> : vector<16xf32>
    %28 = vector.multi_reduction <add>, %27, %cst_12 [1] : vector<16x128xf32> to vector<16xf32>
    %29 = vector.shape_cast %28 : vector<16xf32> to vector<16x1xf32>
    %30 = arith.subf %22, %29 : vector<16x1xf32>
    %c0_13 = arith.constant 0 : index
    %c0_14 = arith.constant 0 : index
    %31 = vector.load %arg5[%c0_13, %c0_14] : memref<16x1xf32, #tpu.memory_space<vmem>>, vector<16x1xf32>
    %32 = arith.mulf %30, %31 : vector<16x1xf32>
    %33 = vector.shape_cast %32 : vector<16x1xf32> to vector<1x16x1xf32>
    %cst_15 = arith.constant dense<0.000000e+00> : vector<1xf32>
    %34 = vector.multi_reduction <add>, %33, %cst_15 [1, 2] : vector<1x16x1xf32> to vector<1xf32>
    %35 = vector.shape_cast %34 : vector<1xf32> to vector<1x1x1xf32>
    %36 = vector.extract %35[0, 0, 0] : f32 from vector<1x1x1xf32>
    %37 = vector.broadcast %36 : f32 to vector<1x1xf32>
    %38 = vector.shape_cast %31 : vector<16x1xf32> to vector<1x16x1xf32>
    %cst_16 = arith.constant dense<0.000000e+00> : vector<1xf32>
    %39 = vector.multi_reduction <add>, %38, %cst_16 [1, 2] : vector<1x16x1xf32> to vector<1xf32>
    %40 = vector.shape_cast %39 : vector<1xf32> to vector<1x1x1xf32>
    %41 = vector.extract %40[0, 0, 0] : f32 from vector<1x1x1xf32>
    %42 = vector.broadcast %41 : f32 to vector<1x1xf32>
    %43 = tpu.iota {dimensions = array<i32: 1>} : vector<1x128xi32>
    %c0_i32_17 = arith.constant 0 : i32
    %44 = vector.broadcast %c0_i32_17 : i32 to vector<1x128xi32>
    %45 = arith.cmpi eq, %43, %44 : vector<1x128xi32>
    %cst_18 = arith.constant 0.000000e+00 : f32
    %46 = vector.shape_cast %37 : vector<1x1xf32> to vector<1x1xf32>
    %47 = vector.broadcast %46 : vector<1x1xf32> to vector<1x128xf32>
    %48 = vector.broadcast %cst_18 : f32 to vector<1x128xf32>
    %49 = arith.select %45, %47, %48 : vector<1x128xi1>, vector<1x128xf32>
    %c1_i32 = arith.constant 1 : i32
    %50 = vector.broadcast %c1_i32 : i32 to vector<1x128xi32>
    %51 = arith.cmpi eq, %43, %50 : vector<1x128xi32>
    %cst_19 = arith.constant 0.000000e+00 : f32
    %52 = vector.shape_cast %42 : vector<1x1xf32> to vector<1x1xf32>
    %53 = vector.broadcast %52 : vector<1x1xf32> to vector<1x128xf32>
    %54 = vector.broadcast %cst_19 : f32 to vector<1x128xf32>
    %55 = arith.select %51, %53, %54 : vector<1x128xi1>, vector<1x128xf32>
    %56 = arith.addf %49, %55 : vector<1x128xf32>
    %c0_20 = arith.constant 0 : index
    %c0_21 = arith.constant 0 : index
    %57 = vector.load %arg6[%c0_20, %c0_21] : memref<1x128xf32, #tpu.memory_space<vmem>>, vector<1x128xf32>
    %58 = arith.addf %57, %56 : vector<1x128xf32>
    %c0_22 = arith.constant 0 : index
    %c0_23 = arith.constant 0 : index
    %59 = vector.load %arg6[%c0_22, %c0_23] : memref<1x128xf32, #tpu.memory_space<vmem>>, vector<1x128xf32>
    tpu.vector_store %arg6[%c0_22, %c0_23], %58 {strides = array<i32>} : memref<1x128xf32, #tpu.memory_space<vmem>>, vector<1x128xf32>,
    return
  }
  func.func @transform_0(%arg0: i32) -> (i32, i32) {
    %c0_i32 = arith.constant 0 : i32
    %c0_i32_0 = arith.constant 0 : i32
    return %arg0, %c0_i32 : i32, i32
  }
  func.func @transform_1(%arg0: i32) -> (i32, i32) {
    %c0_i32 = arith.constant 0 : i32
    %c0_i32_0 = arith.constant 0 : i32
    %c0_i32_1 = arith.constant 0 : i32
    return %c0_i32, %c0_i32_0 : i32, i32
  }
  func.func @transform_2(%arg0: i32) -> (i32, i32) {
    %c0_i32 = arith.constant 0 : i32
    %c0_i32_0 = arith.constant 0 : i32
    %c0_i32_1 = arith.constant 0 : i32
    return %c0_i32, %c0_i32_0 : i32, i32
  }
  func.func @transform_3(%arg0: i32) -> (i32, i32) {
    %c0_i32 = arith.constant 0 : i32
    %c0_i32_0 = arith.constant 0 : i32
    return %arg0, %c0_i32 : i32, i32
  }
  func.func @transform_4(%arg0: i32) -> (i32, i32) {
    %c0_i32 = arith.constant 0 : i32
    %c0_i32_0 = arith.constant 0 : i32
    return %arg0, %c0_i32 : i32, i32
  }
  func.func @transform_5(%arg0: i32) -> (i32, i32) {
    %c0_i32 = arith.constant 0 : i32
    %c0_i32_0 = arith.constant 0 : i32
    %c0_i32_1 = arith.constant 0 : i32
    return %c0_i32, %c0_i32_0 : i32, i32
  }
}

</mosaic_0001>

<bundles_post_ra>
// kernel: node_bert_loss.3
= control target key start
LH: loop header
LB: loop body
LE: loop exit
PB: predicated region body
PF: predicated region fallthrough
CT: control target
= control target key end

     0   :  { %v263_v2 = vmov 0   ;;  %v115_v12 = vlaneseq  ;;  %vm162_vm3 = vcmask 7168   ;;  %s357_s1 = inlined_call_operand.vmem [shape: bf16[128,128], index: 1, kind: input, shape index: {}]   ;;  %s358_s3 = inlined_call_operand.vmem [shape: s32[16,1], index: 3, kind: input, shape index: {}]   ;;  %s359_s2 = inlined_call_operand.vmem [shape: f32[1,128], index: 2, kind: input, shape index: {}]   ;;  %s360_s0 = inlined_call_operand.vmem [shape: bf16[16,128], index: 0, kind: input, shape index: {}]   ;;  %s361_s4 = inlined_call_operand.vmem [shape: f32[16,1], index: 4, kind: input, shape index: {}]   ;;  %s362_s5 = inlined_call_operand.vmem [shape: f32[1,128], index: 5, kind: output, shape index: {}]  }
   0x1   :  { %v245_v0 = vld [vmem:[%s357_s1 + $0x38] sm:$0xff]  ;;  %v244_v1 = vld [vmem:[%s357_s1 + $0x30] sm:$0xff]  ;;  %252 = vset.pattern.permute.xlu1 %v263_v2  ;;  %v140_v3 = vld [vmem:[%s358_s3] sm:$0xff]  ;;  %253 = vset.pattern.permute.xlu0 %v263_v2 }
   0x2   :  { %101 = vmatpush.bf16.msra.mxu0 %v245_v0  ;;  %143 = vperm.xlu1 %252, %v140_v3   ;;  %v243_v4 = vld [vmem:[%s357_s1 + $0x28] sm:$0xff]  ;;  %v242_v6 = vld [vmem:[%s357_s1 + $0x20] sm:$0xff]  ;;  %v241_v7 = vld [vmem:[%s357_s1 + $0x18] sm:$0xff]  ;;  %v328_v14 = vand.u32 127, %v115_v12 }
   0x3   :  { %v141_v5 = vld [vmem:[%s358_s3 + $0x8] sm:$0xff]  ;;  %v240_v8 = vld [vmem:[%s357_s1 + $0x10] sm:$0xff]  ;;  %v238_v10 = vld [vmem:[%s357_s1] sm:$0xff] }
   0x4   :  { %v239_v9 = vld [vmem:[%s357_s1 + $0x8] sm:$0xff]  ;;  %v237_v11 = vld [vmem:[%s360_s0] sm:$0xff]  ;;  %vm117_vm0 = vcmp.lt.s32.totalorder %v328_v14, 24  ;;  %vm187_vm4 = vcmp.eq.s32.totalorder %v328_v14, 0  ;;  %vm190_vm5 = vcmp.eq.s32.totalorder %v328_v14, 1 }
   0x5   :  { %v254_v15 = vld [vmem:[%s359_s2] ss:$0 sm:$0xff]  ;;  %v159_v34 = vld [vmem:[%s361_s4 + $0x8] sm:$0xff] }
   0x6   :  { %102 = vmatpush.bf16.msra.mxu0 %v244_v1  ;;  %v158_v33 = vld [vmem:[%s361_s4] sm:$0xff]  ;;  %v176_v36 = vsel %vm162_vm3, %v159_v34, 0.0 }
   0x7   :  { %v175_v35 = vsel %vm162_vm3, %v158_v33, 0.0 }
   0x8   :  { %v177_v37 = vadd.f32 %v176_v36, %v175_v35 }
   0xa   :  { %103 = vmatpush.bf16.msra.mxu0 %v243_v4  ;;  %146 = vperm.xlu1 %252, %v141_v5   ;;  %v264_v5 = vmov 0.0  }
   0xb   :  { %24 = vst [vmem:[%s362_s5] sm:$0x1] %v264_v5 }
   0xe   :  { %104 = vmatpush.bf16.msra.mxu0 %v242_v6 }
  0x12   :  { %105 = vmatpush.bf16.msra.mxu0 %v241_v7 }
  0x16   :  { %106 = vmatpush.bf16.msra.mxu0 %v240_v8 }
  0x1a   :  { %107 = vmatpush.bf16.msra.mxu0 %v239_v9 }
  0x1e   :  { %108 = vmatpush.bf16.msra.mxu0 %v238_v10  ;;  %v194_v10 = vld [vmem:[%s362_s5] sm:$0x1] }
  0x21   :  { %109 = vmatmul.bf16.vlgmr.msra.gmra.mxu0 %v237_v11 }
  0x74   :  { %v144_v13 = vpop.permute.xlu1 %143 }
  0x75   :  { %vm148_vm2 = vcmp.eq.s32.totalorder %v328_v14, %v144_v13 }
  0x7c   :  { %v147_v19 = vpop.permute.xlu1 %146 }
  0x7d   :  { %vm149_vm1 = vcmp.eq.s32.totalorder %v328_v14, %v147_v19 }
  0x9e   :  { %v110_v16 = vpop.f32.mrf.mxu0 }
  0x9f   :  { %v111_v17 = vadd.f32 %v254_v15, %v110_v16 }
  0xa1   :  { %v118_v18 = vsel %vm117_vm0, %v111_v17, -1e+30  ;;  %v150_v24 = vsel %vm148_vm2, %v111_v17, 0.0 }
  0xa2   :  { %120 = vmax.xlane.f32.xlu0 %v118_v18 }
  0xa6   :  { %v112_v20 = vpop.f32.mrf.mxu0 }
  0xa7   :  { %v113_v21 = vadd.f32 %v254_v15, %v112_v20 }
  0xa9   :  { %v151_v22 = vsel %vm149_vm1, %v113_v21, 0.0  ;;  %v119_v23 = vsel %vm117_vm0, %v113_v21, -1e+30 }
  0xaa   :  { %154 = vadd.xlane.f32.xlu1 %v151_v22  ;;  %122 = vmax.xlane.f32.xlu0 %v119_v23 }
  0xb2   :  { %152 = vadd.xlane.f32.xlu0 %v150_v24 }
  0xba   :  { %178 = vadd.xlane.f32.xlu0 %v177_v37 }
 0x115   :  { %v121_v25 = vpop.xlane.xlu0 %120 }
 0x116   :  { %v124_v26 = vsub.f32 %v118_v18, %v121_v25 }
 0x118   :  { %v126_v27 = vmul.f32 1.442695, %v124_v26 }
 0x11a   :  { %255 = vpow2.f32 %v126_v27 }
 0x11d   :  { %v123_v28 = vpop.xlane.xlu0 %122  ;;  %v155_v48 = vpop.xlane.xlu1 %154 }
 0x11e   :  { %v125_v29 = vsub.f32 %v119_v23, %v123_v28 }
 0x120   :  { %v256_v30 = vpop.eup %255  ;;  %v128_v31 = vmul.f32 1.442695, %v125_v29 }
 0x121   :  { %130 = vadd.xlane.f32.xlu2 %v256_v30 }
 0x122   :  { %257 = vpow2.f32 %v128_v31 }
 0x125   :  { %v153_v44 = vpop.xlane.xlu0 %152 }
 0x128   :  { %v258_v32 = vpop.eup %257 }
 0x129   :  { %132 = vadd.xlane.f32.xlu2 %v258_v32 }
 0x12d   :  { %v179_v55 = vpop.xlane.xlu0 %178 }
 0x12e   :  { %v180_v56 = vrot.slane %v179_v55, 4 }
 0x130   :  { %v181_v57 = vadd.f32 %v180_v56, %v179_v55 }
 0x132   :  { %v182_v58 = vrot.slane %v181_v57, 2 }
 0x134   :  { %v183_v62 = vadd.f32 %v182_v58, %v181_v57 }
 0x136   :  { %v184_v1 = vrot.slane %v183_v62, 1 }
 0x138   :  { %v185_v4 = vadd.f32 %v184_v1, %v183_v62 }
 0x194   :  { %v131_v38 = vpop.xlane.xlu2 %130 }
 0x195   :  { %259 = vlog2.f32 %v131_v38 }
 0x19b   :  { %v260_v39 = vpop.eup %259 }
 0x19c   :  { %v135_v40 = vmul.f32 0.6931472, %v260_v39  ;;  %v133_v41 = vpop.xlane.xlu2 %132 }
 0x19d   :  { %261 = vlog2.f32 %v133_v41 }
 0x19e   :  { %v138_v42 = vadd.f32 %v135_v40, %v121_v25 }
 0x1a0   :  { %v156_v45 = vsub.f32 %v138_v42, %v153_v44 }
 0x1a2   :  { %v160_v50 = vmul.f32 %v158_v33, %v156_v45 }
 0x1a3   :  { %v262_v43 = vpop.eup %261 }
 0x1a4   :  { %v137_v46 = vmul.f32 0.6931472, %v262_v43  ;;  %v163_v52 = vsel %vm162_vm3, %v160_v50, 0.0 }
 0x1a6   :  { %v139_v47 = vadd.f32 %v137_v46, %v123_v28 }
 0x1a8   :  { %v157_v49 = vsub.f32 %v139_v47, %v155_v48 }
 0x1aa   :  { %v161_v51 = vmul.f32 %v159_v34, %v157_v49 }
 0x1ac   :  { %v164_v53 = vsel %vm162_vm3, %v161_v51, 0.0 }
 0x1ad   :  { %v165_v54 = vadd.f32 %v164_v53, %v163_v52 }
 0x1af   :  { %166 = vadd.xlane.f32.xlu2 %v165_v54 }
 0x222   :  { %v167_v59 = vpop.xlane.xlu2 %166 }
 0x223   :  { %v168_v60 = vrot.slane %v167_v59, 4 }
 0x225   :  { %v169_v61 = vadd.f32 %v168_v60, %v167_v59 }
 0x227   :  { %v170_v63 = vrot.slane %v169_v61, 2 }
 0x229   :  { %v171_v0 = vadd.f32 %v170_v63, %v169_v61 }
 0x22b   :  { %v172_v2 = vrot.slane %v171_v0, 1 }
 0x22d   :  { %v173_v3 = vadd.f32 %v172_v2, %v171_v0 }
 0x22f   :  { %246 = vpush %v173_v3 }
 0x230   :  { %248 = vpush %v185_v4 }
 0x260   :  { %s247_s18 = spop %246 }
 0x261   :  { %v188_v6 = vstv %s247_s18  ;;  %s249_s19 = spop %248 }
 0x262   :  { %v189_v7 = vsel %vm187_vm4, %v188_v6, 0.0  ;;  %v191_v8 = vstv %s249_s19 }
 0x263   :  { %v192_v9 = vsel %vm190_vm5, %v191_v8, 0.0 }
 0x264   :  { %v193_v11 = vadd.f32 %v192_v9, %v189_v7 }
 0x266   :  { %v195_v12 = vadd.f32 %v194_v10, %v193_v11 }
 0x268   :  { %196 = vst [vmem:[%s362_s5] sm:$0x1] %v195_v12 }

// kernel: node_bert_loss.2
= control target key start
LH: loop header
LB: loop body
LE: loop exit
PB: predicated region body
PF: predicated region fallthrough
CT: control target
= control target key end

     0   :  { %s3705_s0 = inlined_call_operand.vmem [shape: bf16[2,8,128], index: 0, kind: input, shape index: {}]   ;;  %s3706_s1 = inlined_call_operand.vmem [shape: bf16[2,128,128], index: 1, kind: input, shape index: {}]   ;;  %s3707_s2 = inlined_call_operand.vmem [shape: f32[2,1,128], index: 2, kind: input, shape index: {}]   ;;  %s3708_s3 = inlined_call_operand.vmem [shape: bf16[2,128,128], index: 3, kind: input, shape index: {}]   ;;  %s3709_s4 = inlined_call_operand.vmem [shape: f32[2,1,128], index: 4, kind: input, shape index: {}]   ;;  %s3710_s5 = inlined_call_operand.hbm [shape: bf16[2,128,128], index: 5, kind: input, shape index: {}]   ;;  %s3711_s6 = inlined_call_operand.vmem [shape: f32[2,1,128], index: 6, kind: input, shape index: {}]   ;;  %s3712_s7 = inlined_call_operand.hbm [shape: bf16[2,128,128], index: 7, kind: input, shape index: {}]   ;;  %s3713_s8 = inlined_call_operand.vmem [shape: f32[2,1,128], index: 8, kind: input, shape index: {}]   ;;  %s3714_s9 = inlined_call_operand.vmem [shape: f32[2,1,128], index: 9, kind: input, shape index: {}]   ;;  %s3715_s10 = inlined_call_operand.vmem [shape: f32[2,1,128], index: 10, kind: input, shape index: {}]   ;;  %s3716_s11 = inlined_call_operand.hbm [shape: bf16[2,128,512], index: 11, kind: input, shape index: {}]   ;;  %s3717_s12 = inlined_call_operand.vmem [shape: f32[2,1,512], index: 12, kind: input, shape index: {}]   ;;  %s3718_s13 = inlined_call_operand.hbm [shape: bf16[2,512,128], index: 13, kind: input, shape index: {}]   ;;  %s3719_s14 = inlined_call_operand.vmem [shape: f32[2,1,128], index: 14, kind: input, shape index: {}]   ;;  %s3720_s15 = inlined_call_operand.vmem [shape: f32[2,1,128], index: 15, kind: input, shape index: {}]   ;;  %s3721_s16 = inlined_call_operand.vmem [shape: f32[2,1,128], index: 16, kind: input, shape index: {}]   ;;  %s3722_s17 = inlined_call_operand.vmem [shape: bf16[2,8,128], index: 17, kind: output, shape index: {}]  }
   0x1   :  { %3733 = sst [smem:[#allocation23_spill]] %s3705_s0 }
   0x2   :  { %3734 = sst [smem:[#allocation24_spill]] %s3706_s1 }
   0x3   :  { %3735 = sst [smem:[#allocation25_spill]] %s3708_s3 }
   0x4   :  { %3736 = sst [smem:[#allocation26_spill]] %s3709_s4 }
   0x5   :  { %3737 = sst [smem:[#allocation27_spill]] %s3710_s5 }
   0x6   :  { %3738 = sst [smem:[#allocation28_spill]] %s3711_s6 }
   0x7   :  { %3739 = sst [smem:[#allocation29_spill]] %s3712_s7 }
   0x8   :  { %3740 = sst [smem:[#allocation30_spill]] %s3713_s8 }
   0x9   :  { %3741 = sst [smem:[#allocation31_spill]] %s3714_s9 }
   0xa   :  { %3742 = sst [smem:[#allocation32_spill]] %s3715_s10 }
   0xb   :  { %3743 = sst [smem:[#allocation33_spill]] %s3716_s11 }
   0xc   :  { %3744 = sst [smem:[#allocation34_spill]] %s3717_s12 }
   0xd   :  { %3745 = sst [smem:[#allocation35_spill]] %s3718_s13 }
   0xe   :  { %3746 = sst [smem:[#allocation36_spill]] %s3719_s14 }
   0xf   :  { %3747 = sst [smem:[#allocation37_spill]] %s3720_s15 }
  0x10   :  { %3748 = sst [smem:[#allocation38_spill]] %s3721_s16 }
  0x11   :  { %3749 = sst [smem:[#allocation39_spill]] %s3722_s17 }
  0x12   :  { %22 = vsyncpa [#allocation4], 0 }
  0x13   :  { %24 = vsyncpa [#allocation4 + $0x1], 0 }
  0x14   :  { %25 = vsyncpa [#allocation6], 0 }
  0x15   :  { %27 = vsyncpa [#allocation6 + $0x1], 0 }
  0x16   :  { %28 = vsyncpa [#allocation9], 0 }
  0x17   :  { %30 = vsyncpa [#allocation9 + $0x1], 0  ;;  %s3262_s24 = smov 0   ;;  %s3264_s25 = smov 0  }
  0x18   :  { %s3266_s26 = smov 0   ;;  %s3268_s27 = smov 0  }
  0x19   :  { %s3270_s28 = smov 0   ;;  %s3272_s29 = smov 0  }
  0x1a   :  { %s3274_s0 = smov 0   ;;  %s3276_s30 = smov 0  }
  0x1b LB: > { %3750 = sst [smem:[#allocation13_spill]] %s3140_s25  ;;  %s3725_s18 = sadd.s32 4294967295, %s3164_s30   ;;  %s3164_s30 = sphi %s3276_s30, %s36_s30   ;;  %s3160_s0 = sphi %s3274_s0, %s3804_s0   ;;  %s3156_s29 = sphi %s3272_s29, %s3803_s29   ;;  %s3152_s28 = sphi %s3270_s28, %s3802_s28   ;;  %s3148_s27 = sphi %s3268_s27, %s3801_s27   ;;  %s3144_s26 = sphi %s3266_s26, %s3800_s26   ;;  %s3140_s25 = sphi %s3264_s25, %s3799_s25   ;;  %s3136_s24 = sphi %s3262_s24, %s3798_s24  }
  0x1c   : > { %3751 = sst [smem:[#allocation14_spill]] %s3144_s26  ;;  %s45_s19 = sadd.s32 1, %s3156_s29 }
  0x1d   : > { %3752 = sst [smem:[#allocation15_spill]] %s3156_s29  ;;  %p46_p0 = scmp.ge.s32.totalorder %s45_s19, 2 }
  0x1e   : > { %3753 = sst [smem:[#allocation16_spill]] %s3160_s0  ;;  %s48_s1 = sadd.s32 1, %s3160_s0 }
  0x1f   : > { %3754 = sst [smem:[#allocation17_spill]] %s3164_s30  ;;  %s185_s20 = sadd.s32 1, %s3144_s26 }
  0x20   : > { %p192_p1 = scmp.ne.s32.totalorder %s3144_s26, %s3140_s25  ;;  %s3806_s19 = smov (%p46_p0, %s45_s19), 0 }
  0x21   : > { %3755 = sst [smem:[#allocation18_spill]] %s3806_s19  ;;  %s3808_s1 = smov (!%p46_p0, %s48_s1), %s3160_s0 }
  0x22   : > { %s182_s21 = ssub.s32 %s3156_s29, %s3806_s19  ;;  %p193_p2 = scmp.eq.s32.totalorder %s3164_s30, 0 }
  0x23   : > { %p50_p3 = scmp.ge.s32.totalorder %s3808_s1, 2  ;;  %p183_p4 = scmp.eq.s32.totalorder %s182_s21, 0 }
  0x24   : > { %p194_p5 = por %p193_p2, %p192_p1  ;;  %p198_p6 = scmp.ne.s32.totalorder %s3140_s25, %s3136_s24 }
  0x25   : > { %s3810_s1 = smov (%p50_p3, %s3808_s1), 0  ;;  %p199_p7 = scmp.eq.s32.totalorder %s3725_s18, 0 }
  0x26   : > { %3756 = sst [smem:[#allocation19_spill]] %s3810_s1  ;;  %p2868_p8 = scmp.lt.s32.totalorder %s3164_s30, 4 }
  0x27   : > { %s3316_s22 = scalar_select %p183_p4, %s3144_s26, %s185_s20  }
  0x28   : > { %s3322_s23 = sand.u32 1, %s3144_s26   ;;  %p3324_p9 = por %p199_p7, %p198_p6 }
  0x29   : > { %3757 = sst [smem:[#allocation20_spill]] %s3316_s22  ;;  %s2329_s19 = sshll.u32 %s3322_s23, 6 }
  0x2a   : > { %s2745_s21 = sshll.u32 %s3156_s29, 6  ;;  %p3330_p10 = pnand %p2868_p8, %p194_p5 }
  0x2b   : > { %s597_s20 = sand.u32 1, %s3164_s30   ;;  %s3760_s7 = sld [smem:[#allocation29_spill]] }
  0x2c   : > { %s601_s26 = scalar_lea.vmem [#allocation5], %s2329_s19  ;;  %p2341_p11 = scmp.ge.s32.totalorder %s3164_s30, 1 }
  0x2d   : > { %s609_s17 = sshll.u32 %s601_s26, 4  ;;  %s598_s15 = scalar_lea.sflag [#allocation6], %s597_s20  ;;  %s610_s17 = int_to_ptr.vmem [resolvable:$true] %s609_s17 }
  0x2e   : > { %s3727_s12 = smov 64   ;;  %s3167_s14 = smov 4  }
  0x2f   : > { %p704_p12 = scmp.lt.s32.totalorder %s3164_s30, 5  ;;  %s3762_s5 = sld [smem:[#allocation27_spill]] }
  0x30   : > { %s2335_s9 = sshll.u32 %s3322_s23, 8  ;;  %s570_s8 = scalar_lea.sflag [#allocation4], %s3322_s23 }
  0x31   : > { %s606_s18 = scalar_lea.hbm %s3760_s7, %s2745_s21  ;;  %p3345_p13 = pnand %p2341_p11, %p704_p12 }
  0x32   : > { %s607_s16 = sshll.u32 %s606_s18, 4  ;;  %s573_s7 = scalar_lea.vmem [#allocation3], %s2329_s19  ;;  %s608_s16 = int_to_ptr.hbm [resolvable:$true] %s607_s16 }
  0x33   : > { %2861 = dma.hbm_to_vmem [thread:$0]  (!%p3330_p10), %s608_s16, 1024, %s610_s17, %s598_s15, %s3727_s12, %s3727_s12, %s3167_s14  }
  0x34   : > { %s581_s10 = sshll.u32 %s573_s7, 4  ;;  %s2747_s16 = sshll.u32 %s3156_s29, 8  ;;  %s582_s10 = int_to_ptr.vmem [resolvable:$true] %s581_s10 }
  0x35   : > { %s578_s22 = scalar_lea.hbm %s3762_s5, %s2745_s21  ;;  %s3763_s11 = sld [smem:[#allocation33_spill]] }
  0x36   : > { %s579_s20 = sshll.u32 %s578_s22, 4  ;;  %s641_s19 = scalar_lea.vmem [#allocation7], %s2335_s9  ;;  %s580_s20 = int_to_ptr.hbm [resolvable:$true] %s579_s20 }
  0x37   : > { %2858 = dma.hbm_to_vmem [thread:$0]  (!%p3330_p10), %s580_s20, 1024, %s582_s10, %s570_s8, %s3727_s12, %s3727_s12, %s3167_s14  }
  0x38   : > { %s649_s7 = sshll.u32 %s641_s19, 4  ;;  %s3168_s18 = smov 256   ;;  %s650_s7 = int_to_ptr.vmem [resolvable:$true] %s649_s7 }
  0x39   : > { %s3169_s22 = smov 16   ;;  %s3764_s13 = sld [smem:[#allocation35_spill]] }
  0x3a   : > { %s670_s20 = scalar_lea.vmem [#allocation8], %s2335_s9  ;;  %s667_s6 = scalar_lea.sflag [#allocation9], %s3322_s23 }
  0x3b   : > { %s646_s26 = scalar_lea.hbm %s3763_s11, %s2747_s16  ;;  %s678_s12 = sshll.u32 %s670_s20, 4  ;;  %s679_s12 = int_to_ptr.vmem [resolvable:$true] %s678_s12 }
  0x3c   : > { %s647_s21 = sshll.u32 %s646_s26, 4  ;;  %s3765_s17 = smov 64   ;;  %s648_s21 = int_to_ptr.hbm [resolvable:$true] %s647_s21 }
  0x3d   : > { %2864 = dma.hbm_to_vmem [thread:$0]  (!%p3330_p10), %s648_s21, 4096, %s650_s7, %s598_s15, %s3168_s18, %s3168_s18, %s3169_s22  }
  0x3e   : > { %708 = sbr.rel (%p3345_p13) target bundleno = 2281 (0x8e9), region = 88 }
  0x3f   : > { %s675_s8 = scalar_lea.hbm %s3764_s13, %s2747_s16 }
  0x40   : > { %s676_s10 = sshll.u32 %s675_s8, 4  ;;  %s677_s10 = int_to_ptr.hbm [resolvable:$true] %s676_s10 }
  0x41   : > { %2867 = dma.hbm_to_vmem [thread:$0]  (!%p3330_p10), %s677_s10, 4096, %s679_s12, %s667_s6, %s3765_s17, %s3765_s17, %s3167_s14  }
  0x43   : > { %s710_s15 = sand.u32 1, %s3140_s25  }
  0x44   : > { %s2342_s26 = sshll.u32 %s710_s15, 6  ;;  %s711_s4 = scalar_lea.sflag [#allocation4], %s710_s15 }
  0x45   : > { %s3377_s5 = scalar_lea.vmem [#allocation3], %s2342_s26 }
  0x46   : > { %3123 = dma.done.wait (%p3324_p9), %s711_s4, 1024  }
  0x47   : > { %3125 = vsyncadd (%p3324_p9), %s711_s4, 4294966272  ;;  %s3766_s9 = sadd.s32 4294967295, %s3164_s30   ;;  %s3385_s14 = scalar_lea.vmem [#allocation5], %s2342_s26 }
  0x48   : > { %s720_s23 = sand.u32 1, %s3766_s9  }
  0x49   : > { %s721_s12 = scalar_lea.sflag [#allocation6], %s720_s23 }
  0x4a   : > { %3127 = dma.done.wait (%p3324_p9), %s721_s12, 5120  }
  0x4b   : > { %3129 = vsyncadd (%p3324_p9), %s721_s12, 4294962176  ;;  %s2344_s24 = sshll.u32 %s710_s15, 8  ;;  %s741_s16 = scalar_lea.sflag [#allocation9], %s710_s15 }
  0x4c   : > { %s3391_s1 = scalar_lea.vmem [#allocation7], %s2344_s24  ;;  %s3393_s19 = scalar_lea.vmem [#allocation8], %s2344_s24 }
  0x4d   : > { %3767 = sst [smem:[#allocation21_spill]] %s3391_s1 }
  0x4e   : > { %3768 = sst [smem:[#allocation22_spill]] %s3393_s19 }
  0x4f   : > { %3131 = dma.done.wait (%p3324_p9), %s741_s16, 4096  }
  0x50   : > { %3133 = vsyncadd (%p3324_p9), %s741_s16, 4294963200  ;;  %p855_p0 = scmp.lt.s32.totalorder %s3152_s28, 1  ;;  %p859_p1 = scmp.lt.s32.totalorder %s3148_s27, 1 }
  0x51   : > { %s3769_s22 = sld [smem:[#allocation23_spill]]  ;;  %p2353_p2 = scmp.ne.s32.totalorder %s3148_s27, 0 }
  0x52   : > { %s3812_s28 = smov (!%p855_p0, %s3152_s28), 1  ;;  %s3770_s17 = sld [smem:[#allocation24_spill]] }
  0x53   : > { %s3403_s7 = scalar_select %p859_p1, %s3148_s27, 1 }
  0x54   : > { %s2346_s0 = sshll.u32 %s3812_s28, 2  ;;  %s3771_s3 = sld [smem:[#allocation25_spill]] }
  0x55   : > { %s2749_s10 = sshll.u32 %s3403_s7, 6  ;;  %s3773_s13 = sld [smem:[#allocation28_spill]] }
  0x56   : > { %s3777_s11 = sld [smem:[#allocation36_spill]] }
  0x57   : > { %s858_s8 = scalar_lea.vmem %s3769_s22, %s2346_s0  ;;  %s3780_s4 = sld [smem:[#allocation38_spill]] }
  0x58   : > { %s3412_s15 = scalar_lea.vmem %s3770_s17, %s2749_s10  ;;  %s3779_s17 = sld [smem:[#allocation37_spill]] }
  0x5a   : > { %s3421_s24 = scalar_lea.vmem %s3771_s3, %s2749_s10  ;;  %s2351_s3 = sshll.u32 %s3403_s7, 2 }
  0x5b   : > { %s877_s29 = scalar_lea.vmem %s3773_s13, %s3403_s7  ;;  %s3778_s13 = sld [smem:[#allocation34_spill]] }
  0x5c   : > { %s893_s16 = scalar_lea.vmem %s3777_s11, %s3403_s7  ;;  %s3781_s10 = sld [smem:[#allocation39_spill]] }
  0x5d   : > { %s899_s9 = scalar_lea.vmem %s3780_s4, %s3403_s7 }
  0x5e   : > { %s896_s25 = scalar_lea.vmem %s3779_s17, %s3403_s7  ;;  %908 = sbr.rel (%p2353_p2) target bundleno = 103 (0x67), region = 108 }
  0x61   : > { %s3451_s22 = scalar_lea.vmem %s3778_s13, %s2351_s3 }
  0x62   : > { %s3464_s12 = scalar_lea.vmem %s3781_s10, %s2346_s0 }
  0x63   : > { %v909_v0 = vld [vmem:[%s858_s8] sm:$0xf] }
  0x64   : > { %v910_v1 = vunpack.c.l.bf16 %v909_v0 }
  0x66   : > { %911 = vst [vmem:[#allocation2] sm:$0xff] %v910_v1 }
  0x67 PF: > { %v2758_v2 = vld [vmem:[%s3412_s15 + $0x38] sm:$0xff]  ;;  %v2757_v4 = vld [vmem:[%s3412_s15 + $0x30] sm:$0xff]  ;;  %v2774_v6 = vld [vmem:[%s3377_s5 + $0x38] sm:$0xff]  ;;  %s3782_s0 = scalar_lea.vmem %s3707_s2, %s3403_s7  ;;  %vm1161_vm0 = vcmask 523264   ;;  %vm1197_vm1 = vcmask 1043456   ;;  %vm1181_vm2 = vcmask 64512  }
  0x68   : > { %v2766_v3 = vld [vmem:[%s3421_s24 + $0x38] sm:$0xff]  ;;  %982 = vmatpush.bf16.msra.mxu0 %v2758_v2  ;;  %v2765_v5 = vld [vmem:[%s3421_s24 + $0x30] sm:$0xff]  ;;  %v2756_v7 = vld [vmem:[%s3412_s15 + $0x28] sm:$0xff]  ;;  %1145 = vmatpush.bf16.msra.mxu2 %v2774_v6  ;;  %s3789_s17 = sld [smem:[#allocation22_spill]]  ;;  %p2742_p3 = scmp.ne.s32.totalorder %s3148_s27, 1 }
  0x69   : > { %1064 = vmatpush.bf16.msra.mxu1 %v2766_v3  ;;  %v2764_v8 = vld [vmem:[%s3421_s24 + $0x28] sm:$0xff]  ;;  %v2773_v9 = vld [vmem:[%s3377_s5 + $0x30] sm:$0xff]  ;;  %v2755_v10 = vld [vmem:[%s3412_s15 + $0x20] sm:$0xff]  ;;  %s3790_s4 = sld [smem:[#allocation31_spill]] }
  0x6a   : > { %v2763_v11 = vld [vmem:[%s3421_s24 + $0x20] sm:$0xff]  ;;  %v2772_v12 = vld [vmem:[%s3377_s5 + $0x28] sm:$0xff]  ;;  %v2754_v13 = vld [vmem:[%s3412_s15 + $0x18] sm:$0xff]  ;;  %s3792_s3 = sld [smem:[#allocation32_spill]] }
  0x6b   : > { %v2762_v14 = vld [vmem:[%s3421_s24 + $0x18] sm:$0xff]  ;;  %v2771_v15 = vld [vmem:[%s3377_s5 + $0x20] sm:$0xff]  ;;  %v2753_v16 = vld [vmem:[%s3412_s15 + $0x10] sm:$0xff] }
  0x6c   : > { %983 = vmatpush.bf16.msra.mxu0 %v2757_v4  ;;  %1146 = vmatpush.bf16.msra.mxu2 %v2773_v9  ;;  %v2761_v17 = vld [vmem:[%s3421_s24 + $0x10] sm:$0xff]  ;;  %v2770_v18 = vld [vmem:[%s3377_s5 + $0x18] sm:$0xff]  ;;  %v2752_v19 = vld [vmem:[%s3412_s15 + $0x8] sm:$0xff] }
  0x6d   : > { %1065 = vmatpush.bf16.msra.mxu1 %v2765_v5  ;;  %v2760_v20 = vld [vmem:[%s3421_s24 + $0x8] sm:$0xff]  ;;  %v2769_v21 = vld [vmem:[%s3377_s5 + $0x10] sm:$0xff]  ;;  %v2751_v22 = vld [vmem:[%s3412_s15] sm:$0xff] }
  0x6e   : > { %v2759_v23 = vld [vmem:[%s3421_s24] sm:$0xff]  ;;  %v2768_v25 = vld [vmem:[%s3377_s5 + $0x8] sm:$0xff]  ;;  %v2767_v27 = vld [vmem:[%s3377_s5] sm:$0xff]  ;;  %s3783_s24 = sld [smem:[#allocation26_spill]]  ;;  %s3170_s5 = smov 64  }
  0x6f   : > { %v3489_v24 = vld [vmem:[#allocation2] sm:$0xff]  ;;  %s3791_s19 = scalar_lea.vmem %s3790_s4, %s3403_s7 }
  0x70   : > { %984 = vmatpush.bf16.msra.mxu0 %v2756_v7  ;;  %1147 = vmatpush.bf16.msra.mxu2 %v2772_v12  ;;  %v913_v26 = vpack.c.bf16 %v3489_v24, %v3489_v24  ;;  %v2939_v28 = vld [vmem:[%s3782_s0] ss:$0 sm:$0xff]  ;;  %s3793_s1 = scalar_lea.vmem %s3792_s3, %s3403_s7 }
  0x71   : > { %1066 = vmatpush.bf16.msra.mxu1 %v2764_v8  ;;  %v2941_v46 = vld [vmem:[%s877_s29] ss:$0 sm:$0xff]  ;;  %s3786_s29 = sld [smem:[#allocation21_spill]] }
  0x74   : > { %985 = vmatpush.bf16.msra.mxu0 %v2755_v10  ;;  %1148 = vmatpush.bf16.msra.mxu2 %v2771_v15  ;;  %s3784_s21 = scalar_lea.vmem %s3783_s24, %s3403_s7 }
  0x75   : > { %1067 = vmatpush.bf16.msra.mxu1 %v2763_v11  ;;  %v2940_v29 = vld [vmem:[%s3784_s21] ss:$0 sm:$0xff] }
  0x78   : > { %986 = vmatpush.bf16.msra.mxu0 %v2754_v13  ;;  %1149 = vmatpush.bf16.msra.mxu2 %v2770_v18 }
  0x79   : > { %1068 = vmatpush.bf16.msra.mxu1 %v2762_v14 }
  0x7c   : > { %987 = vmatpush.bf16.msra.mxu0 %v2753_v16  ;;  %1150 = vmatpush.bf16.msra.mxu2 %v2769_v21  ;;  %v2780_v21 = vld [vmem:[%s3385_s14 + $0x28] sm:$0xff] }
  0x7d   : > { %1069 = vmatpush.bf16.msra.mxu1 %v2761_v17 }
  0x80   : > { %988 = vmatpush.bf16.msra.mxu0 %v2752_v19  ;;  %1151 = vmatpush.bf16.msra.mxu2 %v2768_v25  ;;  %v2782_v19 = vld [vmem:[%s3385_s14 + $0x38] sm:$0xff]  ;;  %v2777_v25 = vld [vmem:[%s3385_s14 + $0x10] sm:$0xff] }
  0x81   : > { %1070 = vmatpush.bf16.msra.mxu1 %v2760_v20  ;;  %v2781_v20 = vld [vmem:[%s3385_s14 + $0x30] sm:$0xff] }
  0x84   : > { %989 = vmatpush.bf16.msra.mxu0 %v2751_v22  ;;  %1152 = vmatpush.bf16.msra.mxu2 %v2767_v27  ;;  %v2779_v22 = vld [vmem:[%s3385_s14 + $0x20] sm:$0xff] }
  0x85   : > { %1071 = vmatpush.bf16.msra.mxu1 %v2759_v23  ;;  %v2778_v23 = vld [vmem:[%s3385_s14 + $0x18] sm:$0xff] }
  0x87   : > { %990 = vmatmul.bf16.vlgmr.msra.gmra.mxu0 %v913_v26  ;;  %1153 = vmatmul.bf16.vlgmr.msra.gmra.mxu2 %v913_v26 }
  0x88   : > { %1072 = vmatmul.bf16.vlgmr.msra.gmra.mxu1 %v913_v26  ;;  %v2776_v26 = vld [vmem:[%s3385_s14 + $0x8] sm:$0xff] }
  0x89   : > { %1358 = vmatpush.bf16.msrb.mxu1 %v2782_v19 }
  0x8d   : > { %1359 = vmatpush.bf16.msrb.mxu1 %v2781_v20  ;;  %v2804_v20 = vld [vmem:[%s3786_s29 + $0xac] sm:$0xf] }
  0x91   : > { %1360 = vmatpush.bf16.msrb.mxu1 %v2780_v21  ;;  %v2578_v21 = vld [vmem:[%s3786_s29 + $0xb8] sm:$0xf0] }
  0x95   : > { %1361 = vmatpush.bf16.msrb.mxu1 %v2779_v22  ;;  %v2581_v22 = vor.u32 %v2804_v20, %v2578_v21 }
  0x99   : > { %1362 = vmatpush.bf16.msrb.mxu1 %v2778_v23  ;;  %v2552_v23 = vld [vmem:[%s3786_s29 + $0x80] sm:$0xf] }
  0x9d   : > { %1363 = vmatpush.bf16.msrb.mxu1 %v2777_v25  ;;  %v2801_v25 = vld [vmem:[%s3786_s29 + $0x8c] sm:$0xf0] }
  0xa1   : > { %1364 = vmatpush.bf16.msrb.mxu1 %v2776_v26  ;;  %v2799_v26 = vld [vmem:[%s3786_s29 + $0x84] sm:$0xf] }
 0x104   : > { %v991_v30 = vpop.f32.mrf.mxu0 }
 0x105   : > { %v1073_v31 = vpop.f32.mrf.mxu1  ;;  %v992_v32 = vadd.f32 %v2939_v28, %v991_v30 }
 0x106   : > { %v1074_v33 = vadd.f32 %v2940_v29, %v1073_v31  ;;  %v2775_v29 = vld [vmem:[%s3385_s14] sm:$0xff]  ;;  %s3787_s14 = sld [smem:[#allocation30_spill]] }
 0x107   : > { %v995_v34 = vmul.f32 0.125, %v992_v32  ;;  %1365 = vmatpush.bf16.msrb.mxu1 %v2775_v29  ;;  %v2560_v29 = vld [vmem:[%s3786_s29 + $0x88] sm:$0xf] }
 0x108   : > { %v1159_v35 = vpack.c.bf16 %v1074_v33, %v1074_v33 }
 0x109   : > { %v1158_v36 = vpack.c.bf16 %v995_v34, %v995_v34 }
 0x10a   : > { %v1166_v37 = vsel %vm1161_vm0, %v1159_v35, 0  ;;  %v1221_v38 = vunpack.c.l.b16 %v1159_v35  ;;  %v1154_v43 = vpop.f32.mrf.mxu2 }
 0x10b   : > { %1175 = vmatpush.bf16.xpose.msra.mxu3 %v1166_v37  ;;  %v1216_v42 = vunpack.c.l.b16 %v1158_v36  ;;  %v1155_v47 = vadd.f32 %v2941_v46, %v1154_v43  ;;  %v2813_v43 = vld [vmem:[%s3786_s29 + $0xec] sm:$0xf0]  ;;  %v2602_v46 = vld [vmem:[%s3786_s29 + $0xf0] sm:$0xf0] }
 0x10c   : > { %v1222_v39 = vpack.c.b16 %v1221_v38, %v1221_v38  ;;  %v993_v40 = vpop.f32.mrf.mxu0  ;;  %s3788_s6 = scalar_lea.vmem %s3787_s14, %s3403_s7 }
 0x10d   : > { %v1075_v41 = vpop.f32.mrf.mxu1  ;;  %v1217_v44 = vpack.c.b16 %v1216_v42, %v1216_v42  ;;  %v1160_v48 = vpack.c.bf16 %v1155_v47, %v1155_v47  ;;  %v2600_v42 = vld [vmem:[%s3786_s29 + $0xe0] sm:$0xf]  ;;  %v2608_v47 = vld [vmem:[%s3786_s29 + $0xe8] sm:$0xf] }
 0x10e   : > { %1223 = vrot.lane.b32.xlu1 %v1222_v39, %s3170_s5  ;;  %v3171_v41 = vmov 128.0  }
 0x10f   : > { %v1199_v49 = vsel %vm1197_vm1, %v1160_v48, 0  ;;  %v1257_v60 = vunpack.c.l.b16 %v1160_v48  ;;  %v2814_v48 = vld [vmem:[%s3786_s29 + $0xf4] sm:$0xf0] }
 0x111   : > { %v1258_v61 = vpack.c.b16 %v1257_v60, %v1257_v60 }
 0x112   : > { %2450 = vmatmul.msk.bf16.vlgmr.msra.gmra.mxu3 %vm1161_vm0, %v1158_v36  ;;  %v1156_v45 = vpop.f32.mrf.mxu2  ;;  %v2942_v36 = vld [vmem:[%s3788_s6] ss:$0 sm:$0xff] }
 0x113   : > { %1208 = vmatpush.bf16.msrb.mxu3 %v1199_v49  ;;  %v2601_v45 = vor.u32 %v2813_v43, %v2600_v42  ;;  %v2798_v42 = vld [vmem:[%s3786_s29 + $0x74] sm:$0xf0] }
 0x115   : > { %1612 = vmatpush.bf16.msrb.mxu2 %v2601_v45  ;;  %v2796_v45 = vld [vmem:[%s3786_s29 + $0x6c] sm:$0xf] }
 0x116   : > { %1218 = vrot.lane.b32.xlu1 %v1217_v44, %s3170_s5  ;;  %v2811_v44 = vld [vmem:[%s3786_s29 + $0xe4] sm:$0xf] }
 0x117   : > { %v2605_v49 = vor.u32 %v2811_v44, %v2602_v46  ;;  %v2546_v46 = vld [vmem:[%s3786_s29 + $0x78] sm:$0xf0] }
 0x180   : > { %v1224_v50 = vpop.permute.xlu1 %1223 }
 0x181   : > { %v1229_v51 = vsel %vm1161_vm0, %v1224_v50, 0  ;;  %v2609_v50 = vor.u32 %v2814_v48, %v2608_v47  ;;  %v2549_v47 = vor.u32 %v2796_v45, %v2546_v46  ;;  %v2520_v48 = vld [vmem:[%s3786_s29 + $0x40] sm:$0xf]  ;;  %v2821_v45 = vld [vmem:[%s3789_s17 + $0x30] sm:$0xff] }
 0x182   : > { %1238 = vmatpush.bf16.xpose.msra.mxu3 %v1229_v51  ;;  %v2812_v51 = vld [vmem:[%s3786_s29 + $0xec] sm:$0xf]  ;;  %v2829_v46 = vld [vmem:[%s3789_s17 + $0x70] sm:$0xff] }
 0x188   : > { %v1219_v4 = vpop.permute.xlu1 %1218 }
 0x195   : > { %v1177_v52 = vpop.f32.mrf.mxu3 }
 0x196   : > { %v1182_v53 = vsel %vm1181_vm2, %v1177_v52, -inf }
 0x197   : > { %1183 = vmax.xlane.f32.xlu0 %v1182_v53 }
 0x19d   : > { %v1179_v54 = vpop.f32.mrf.mxu3 }
 0x20a   : > { %v1184_v55 = vpop.xlane.xlu0 %1183 }
 0x20b   : > { %v1185_v56 = vsub.f32 %v1177_v52, %v1184_v55  ;;  %v2610_v52 = vld [vmem:[%s3786_s29 + $0xf8] sm:$0xf0] }
 0x20c   : > { %v2613_v53 = vor.u32 %v2812_v51, %v2610_v52  ;;  %v2522_v52 = vld [vmem:[%s3786_s29 + $0x50] sm:$0xf0] }
 0x20d   : > { %v1186_v57 = vmul.f32 1.442695, %v1185_v56 }
 0x20e   : > { %1651 = vmatpush.bf16.msra.mxu1 %v2613_v53  ;;  %v2528_v53 = vld [vmem:[%s3786_s29 + $0x48] sm:$0xf] }
 0x20f   : > { %2948 = vpow2.f32 %v1186_v57 }
 0x215   : > { %v2949_v58 = vpop.eup %2948 }
 0x216   : > { %v1188_v59 = vsel %vm1181_vm2, %v2949_v58, 0.0 }
 0x217   : > { %1189 = vadd.xlane.f32.xlu0 %v1188_v59 }
 0x22b   : > { %1259 = vrot.lane.b32.xlu0 %v1258_v61, %s3170_s5 }
 0x28a   : > { %v1190_v62 = vpop.xlane.xlu0 %1189 }
 0x28b   : > { %2950 = vrcp.f32 %v1190_v62 }
 0x291   : > { %v2951_v63 = vpop.eup %2950 }
 0x292   : > { %v1192_v0 = vmul.f32 %v2951_v63, %v2949_v58  ;;  %v2584_v63 = vld [vmem:[%s3786_s29 + $0xc0] sm:$0xf] }
 0x294   : > { %v1193_v1 = vpack.c.bf16 %v1192_v0, %v1192_v0  ;;  %v2809_v0 = vld [vmem:[%s3786_s29 + $0xcc] sm:$0xf0] }
 0x296   : > { %2451 = vmatmul.msk.bf16.vlgmr.msrb.gmra.mxu3 %vm1181_vm2, %v1193_v1  ;;  %v2807_v1 = vld [vmem:[%s3786_s29 + $0xc4] sm:$0xf] }
 0x297   : > { %1625 = vmatpush.bf16.msrb.mxu3 %v2605_v49  ;;  %v2793_v49 = vld [vmem:[%s3786_s29 + $0x4c] sm:$0xf0] }
 0x298   : > { %v2521_v51 = vor.u32 %v2793_v49, %v2520_v48  ;;  %v2843_v48 = vld [vmem:[%s3789_s17 + $0xe0] sm:$0xff]  ;;  %v2820_v49 = vld [vmem:[%s3789_s17 + $0x28] sm:$0xff] }
 0x29d   : > { %v1260_v2 = vpop.permute.xlu0 %1259 }
 0x29e   : > { %v1265_v3 = vsel %vm1197_vm1, %v1260_v2, 0  ;;  %v2585_v2 = vor.u32 %v2809_v0, %v2584_v63  ;;  %v2787_v63 = vld [vmem:[%s3786_s29 + $0x24] sm:$0xf] }
 0x29f   : > { %1274 = vmatpush.bf16.msrb.mxu0 %v1265_v3  ;;  %v2586_v3 = vld [vmem:[%s3786_s29 + $0xd0] sm:$0xf0] }
 0x2a0   : > { %1613 = vmatpush.bf16.msrb.mxu2 %v2585_v2  ;;  %v2512_v2 = vld [vmem:[%s3786_s29 + $0x28] sm:$0xf] }
 0x2a3   : > { %1638 = vmatpush.bf16.msra.mxu0 %v2609_v50  ;;  %v2791_v50 = vld [vmem:[%s3786_s29 + $0x44] sm:$0xf] }
 0x2a6   : > { %2452 = vmatmul.msk.bf16.vlgmr.msra.gmra.mxu3 %vm1161_vm0, %v1219_v4  ;;  %v2592_v4 = vld [vmem:[%s3786_s29 + $0xc8] sm:$0xf] }
 0x319   : > { %v1210_v5 = vpop.f32.mrf.mxu3 }
 0x31a   : > { %v1214_v33 = vpack.c.bf16 %v1210_v5, %v1210_v5  ;;  %v2810_v5 = vld [vmem:[%s3786_s29 + $0xd4] sm:$0xf0] }
 0x321   : > { %v1212_v6 = vpop.f32.mrf.mxu3 }
 0x322   : > { %v2589_v6 = vor.u32 %v2807_v1, %v2586_v3  ;;  %v2506_v1 = vld [vmem:[%s3786_s29 + $0x30] sm:$0xf0]  ;;  %v2790_v3 = vld [vmem:[%s3786_s29 + $0x34] sm:$0xf0] }
 0x324   : > { %1626 = vmatpush.bf16.msrb.mxu3 %v2589_v6  ;;  %v2788_v6 = vld [vmem:[%s3786_s29 + $0x2c] sm:$0xf] }
 0x329   : > { %v1240_v7 = vpop.f32.mrf.mxu3 }
 0x32a   : > { %v1244_v8 = vsel %vm1181_vm2, %v1240_v7, -inf }
 0x32b   : > { %1245 = vmax.xlane.f32.xlu2 %v1244_v8  ;;  %v2808_v8 = vld [vmem:[%s3786_s29 + $0xcc] sm:$0xf] }
 0x331   : > { %v1242_v9 = vpop.f32.mrf.mxu3 }
 0x332   : > { %v2594_v9 = vld [vmem:[%s3786_s29 + $0xd8] sm:$0xf0] }
 0x39e   : > { %v1246_v10 = vpop.xlane.xlu2 %1245 }
 0x39f   : > { %v1247_v11 = vsub.f32 %v1240_v7, %v1246_v10  ;;  %v2593_v7 = vor.u32 %v2810_v5, %v2592_v4  ;;  %v2597_v10 = vor.u32 %v2808_v8, %v2594_v9  ;;  %v2509_v4 = vor.u32 %v2787_v63, %v2506_v1  ;;  %v2488_v8 = vld [vmem:[%s3786_s29] sm:$0xf]  ;;  %v2825_v63 = vld [vmem:[%s3789_s17 + $0x50] sm:$0xff] }
 0x3a0   : > { %v2513_v5 = vor.u32 %v2790_v3, %v2512_v2  ;;  %v2839_v1 = vld [vmem:[%s3789_s17 + $0xc0] sm:$0xff]  ;;  %v2816_v2 = vld [vmem:[%s3789_s17 + $0x8] sm:$0xff] }
 0x3a1   : > { %v1248_v12 = vmul.f32 1.442695, %v1247_v11  ;;  %1639 = vmatpush.bf16.msra.mxu0 %v2593_v7  ;;  %v2568_v11 = vld [vmem:[%s3786_s29 + $0xa0] sm:$0xf]  ;;  %1652 = vmatpush.bf16.msra.mxu1 %v2597_v10  ;;  %v2514_v7 = vld [vmem:[%s3786_s29 + $0x38] sm:$0xf0] }
 0x3a2   : > { %v2517_v9 = vor.u32 %v2788_v6, %v2514_v7  ;;  %v2785_v10 = vld [vmem:[%s3786_s29 + $0xc] sm:$0xf0]  ;;  %v2824_v3 = vld [vmem:[%s3789_s17 + $0x48] sm:$0xff]  ;;  %v2823_v6 = vld [vmem:[%s3789_s17 + $0x40] sm:$0xff] }
 0x3a3   : > { %2952 = vpow2.f32 %v1248_v12  ;;  %v2805_v12 = vld [vmem:[%s3786_s29 + $0xac] sm:$0xf0] }
 0x3a5   : > { %1653 = vmatpush.bf16.msra.mxu1 %v2581_v22  ;;  %v2838_v22 = vld [vmem:[%s3789_s17 + $0xb8] sm:$0xff] }
 0x3a9   : > { %v2953_v13 = vpop.eup %2952 }
 0x3aa   : > { %v1250_v14 = vsel %vm1181_vm2, %v2953_v13, 0.0 }
 0x3ab   : > { %1251 = vadd.xlane.f32.xlu2 %v1250_v14  ;;  %v2569_v14 = vor.u32 %v2805_v12, %v2568_v11  ;;  %v2783_v11 = vld [vmem:[%s3786_s29 + $0x4] sm:$0xf]  ;;  %v2490_v12 = vld [vmem:[%s3786_s29 + $0x10] sm:$0xf0] }
 0x3ad   : > { %1614 = vmatpush.bf16.msrb.mxu2 %v2569_v14  ;;  %v2493_v14 = vor.u32 %v2783_v11, %v2490_v12 }
 0x41e   : > { %v1252_v15 = vpop.xlane.xlu2 %1251 }
 0x41f   : > { %2954 = vrcp.f32 %v1252_v15  ;;  %v2570_v15 = vld [vmem:[%s3786_s29 + $0xb0] sm:$0xf0] }
 0x420   : > { %2956 = vrcp.f32 %v3171_v41  ;;  %v2544_v41 = vld [vmem:[%s3786_s29 + $0x68] sm:$0xf] }
 0x421   : > { %v2545_v44 = vor.u32 %v2798_v42, %v2544_v41  ;;  %v2830_v42 = vld [vmem:[%s3789_s17 + $0x78] sm:$0xff] }
 0x425   : > { %v2955_v16 = vpop.eup %2954 }
 0x426   : > { %v1254_v17 = vmul.f32 %v2955_v16, %v2953_v13  ;;  %v2957_v54 = vpop.eup %2956  ;;  %v2803_v13 = vld [vmem:[%s3786_s29 + $0xa4] sm:$0xf]  ;;  %v2576_v16 = vld [vmem:[%s3786_s29 + $0xa8] sm:$0xf] }
 0x427   : > { %vm1381_vm3 = vweird.f32 %v2957_v54 }
 0x428   : > { %v1255_v18 = vpack.c.bf16 %v1254_v17, %v1254_v17  ;;  %v2806_v17 = vld [vmem:[%s3786_s29 + $0xb4] sm:$0xf0] }
 0x429   : > { %v2577_v19 = vor.u32 %v2806_v17, %v2576_v16  ;;  %v2786_v16 = vld [vmem:[%s3786_s29 + $0x14] sm:$0xf0]  ;;  %v2784_v17 = vld [vmem:[%s3786_s29 + $0xc] sm:$0xf] }
 0x42a   : > { %2453 = vmatmul.msk.bf16.vlgmr.msrb.gmra.mxu0 %vm1181_vm2, %v1255_v18  ;;  %v2573_v18 = vor.u32 %v2803_v13, %v2570_v15  ;;  %v2489_v13 = vor.u32 %v2785_v10, %v2488_v8  ;;  %v2496_v15 = vld [vmem:[%s3786_s29 + $0x8] sm:$0xf] }
 0x42b   : > { %1640 = vmatpush.bf16.msra.mxu0 %v2577_v19  ;;  %v2498_v19 = vld [vmem:[%s3786_s29 + $0x18] sm:$0xf0] }
 0x42c   : > { %1627 = vmatpush.bf16.msrb.mxu3 %v2573_v18  ;;  %v2497_v18 = vor.u32 %v2786_v16, %v2496_v15  ;;  %v2501_v20 = vor.u32 %v2784_v17, %v2498_v19 }
 0x4a7   : > { %v1276_v27 = vpop.f32.mrf.mxu0 }
 0x4a8   : > { %v1280_v28 = vpack.c.bf16 %v1276_v27, %v1276_v27  ;;  %v2553_v27 = vor.u32 %v2801_v25, %v2552_v23  ;;  %v2846_v23 = vld [vmem:[%s3789_s17 + $0xf8] sm:$0xff] }
 0x4aa   : > { %v1282_v30 = vunpack.c.l.b16 %v1280_v28  ;;  %v2554_v28 = vld [vmem:[%s3786_s29 + $0x90] sm:$0xf0]  ;;  %1615 = vmatpush.bf16.msrb.mxu2 %v2553_v27 }
 0x4ab   : > { %v2845_v27 = vld [vmem:[%s3789_s17 + $0xf0] sm:$0xff] }
 0x4ac   : > { %v1283_v31 = vpack.c.b16 %v1282_v30, %v1282_v30  ;;  %v2802_v30 = vld [vmem:[%s3786_s29 + $0x94] sm:$0xf0] }
 0x4ae   : > { %1284 = vrot.lane.b32.xlu1 %v1283_v31, %s3170_s5  ;;  %v2557_v31 = vor.u32 %v2799_v26, %v2554_v28  ;;  %v2837_v26 = vld [vmem:[%s3789_s17 + $0xb0] sm:$0xff] }
 0x4af   : > { %v1278_v32 = vpop.f32.mrf.mxu0 }
 0x4b0   : > { %v2561_v32 = vor.u32 %v2802_v30, %v2560_v29  ;;  %1628 = vmatpush.bf16.msrb.mxu3 %v2557_v31 }
 0x4b2   : > { %1641 = vmatpush.bf16.msra.mxu0 %v2561_v32 }
 0x4b6   : > { %1642 = vmatpush.bf16.msra.mxu0 %v2545_v44  ;;  %v2844_v44 = vld [vmem:[%s3789_s17 + $0xe8] sm:$0xff] }
 0x520   : > { %v1285_v34 = vpop.permute.xlu1 %1284 }
 0x521   : > { %v1288_v35 = vsel %vm1161_vm0, %v1214_v33, %v1285_v34  ;;  %v2800_v33 = vld [vmem:[%s3786_s29 + $0x8c] sm:$0xf]  ;;  %v2562_v34 = vld [vmem:[%s3786_s29 + $0x98] sm:$0xf0] }
 0x522   : > { %1366 = vmatmul.bf16.vlgmr.msrb.gmra.mxu1 %v1288_v35  ;;  %v2565_v35 = vor.u32 %v2800_v33, %v2562_v34 }
 0x524   : > { %1654 = vmatpush.bf16.msra.mxu1 %v2565_v35  ;;  %v2943_v35 = vld [vmem:[%s3791_s19] ss:$0 sm:$0xff] }
 0x528   : > { %1655 = vmatpush.bf16.msra.mxu1 %v2549_v47  ;;  %v2835_v47 = vld [vmem:[%s3789_s17 + $0xa0] sm:$0xff] }
 0x59f   : > { %v1367_v37 = vpop.f32.mrf.mxu1 }
 0x5a0   : > { %v1368_v38 = vadd.f32 %v2942_v36, %v1367_v37  ;;  %v2536_v36 = vld [vmem:[%s3786_s29 + $0x60] sm:$0xf]  ;;  %v2797_v37 = vld [vmem:[%s3786_s29 + $0x6c] sm:$0xf0] }
 0x5a2   : > { %v1371_v39 = vadd.f32 %v1368_v38, %v3489_v24  ;;  %v1377_v24 = vmul.f32 128.0, %v2957_v54  ;;  %v2795_v38 = vld [vmem:[%s3786_s29 + $0x64] sm:$0xf] }
 0x5a4   : > { %1374 = vadd.xlane.f32.xlu2 %v1371_v39  ;;  %v1378_v55 = vsub.f32 1.0, %v1377_v24  ;;  %v2525_v24 = vor.u32 %v2791_v50, %v2522_v52  ;;  %v2828_v50 = vld [vmem:[%s3789_s17 + $0x68] sm:$0xff]  ;;  %v2842_v52 = vld [vmem:[%s3789_s17 + $0xd8] sm:$0xff] }
 0x5a6   : > { %v1379_v56 = vmul.f32 %v2957_v54, %v1378_v55 }
 0x5a7   : > { %v1369_v40 = vpop.f32.mrf.mxu1 }
 0x5a8   : > { %v1380_v57 = vadd.f32 %v2957_v54, %v1379_v56  ;;  %v2538_v40 = vld [vmem:[%s3786_s29 + $0x70] sm:$0xf0]  ;;  %v2792_v56 = vld [vmem:[%s3786_s29 + $0x4c] sm:$0xf] }
 0x5a9   : > { %v2541_v43 = vor.u32 %v2795_v38, %v2538_v40  ;;  %v2944_v38 = vld [vmem:[%s3793_s1] ss:$0 sm:$0xff] }
 0x5aa   : > { %v3549_v58 = vsel %vm1381_vm3, %v2957_v54, %v1380_v57  ;;  %v2794_v54 = vld [vmem:[%s3786_s29 + $0x54] sm:$0xf0]  ;;  %v2530_v57 = vld [vmem:[%s3786_s29 + $0x58] sm:$0xf0] }
 0x5ab   : > { %1629 = vmatpush.bf16.msrb.mxu3 %v2541_v43  ;;  %v2529_v55 = vor.u32 %v2794_v54, %v2528_v53  ;;  %v2836_v43 = vld [vmem:[%s3789_s17 + $0xa8] sm:$0xff]  ;;  %v2819_v53 = vld [vmem:[%s3789_s17 + $0x20] sm:$0xff] }
 0x5ac   : > { %v2827_v54 = vld [vmem:[%s3789_s17 + $0x60] sm:$0xff] }
 0x5ad   : > { %1643 = vmatpush.bf16.msra.mxu0 %v2529_v55  ;;  %v2841_v55 = vld [vmem:[%s3789_s17 + $0xd0] sm:$0xff] }
 0x5af   : > { %1630 = vmatpush.bf16.msrb.mxu3 %v2525_v24  ;;  %v2833_v24 = vld [vmem:[%s3789_s17 + $0x90] sm:$0xff] }
 0x5b1   : > { %1644 = vmatpush.bf16.msra.mxu0 %v2513_v5  ;;  %v2815_v5 = vld [vmem:[%s3789_s17] sm:$0xff] }
 0x5b3   : > { %1631 = vmatpush.bf16.msrb.mxu3 %v2509_v4  ;;  %v1442_v4 = vld [vmem:[%s3451_s22] sm:$0xf] }
 0x5b4   : > { %v1446_v7 = vperm.slane %v1442_v4, 2  ;;  %v1447_v8 = vperm.slane %v1442_v4, 3 }
 0x5b5   : > { %1645 = vmatpush.bf16.msra.mxu0 %v2497_v18 }
 0x5b7   : > { %1632 = vmatpush.bf16.msrb.mxu3 %v2493_v14  ;;  %v1445_v14 = vperm.slane %v1442_v4, 1 }
 0x5b9   : > { %1990 = vmatpush.bf16.msrb.mxu0 %v2838_v22 }
 0x5bb   : > { %1977 = vmatpush.bf16.msra.mxu3 %v2830_v42 }
 0x5bd   : > { %1991 = vmatpush.bf16.msrb.mxu0 %v2837_v26 }
 0x5bf   : > { %1978 = vmatpush.bf16.msra.mxu3 %v2829_v46 }
 0x5c1   : > { %1992 = vmatpush.bf16.msrb.mxu0 %v2836_v43 }
 0x5c3   : > { %1979 = vmatpush.bf16.msra.mxu3 %v2828_v50 }
 0x5c5   : > { %1993 = vmatpush.bf16.msrb.mxu0 %v2835_v47 }
 0x5c7   : > { %1980 = vmatpush.bf16.msra.mxu3 %v2827_v54 }
 0x617   : > { %v1375_v59 = vpop.xlane.xlu2 %1374 }
 0x618   : > { %v1383_v60 = vmul.f32 %v3549_v58, %v1375_v59  ;;  %v2533_v59 = vor.u32 %v2792_v56, %v2530_v57  ;;  %v2818_v56 = vld [vmem:[%s3789_s17 + $0x18] sm:$0xff] }
 0x619   : > { %v2826_v57 = vld [vmem:[%s3789_s17 + $0x58] sm:$0xff] }
 0x61a   : > { %v3552_v61 = vsub.f32 %v1371_v39, %v1383_v60  ;;  %v2537_v39 = vor.u32 %v2797_v37, %v2536_v36  ;;  %v2504_v60 = vld [vmem:[%s3786_s29 + $0x20] sm:$0xf]  ;;  %1656 = vmatpush.bf16.msra.mxu1 %v2533_v59  ;;  %v2832_v59 = vld [vmem:[%s3789_s17 + $0x88] sm:$0xff]  ;;  %1981 = vmatpush.bf16.msra.mxu3 %v2826_v57 }
 0x61c   : > { %v1385_v62 = vmul.f32 %v3552_v61, %v3552_v61  ;;  %1616 = vmatpush.bf16.msrb.mxu2 %v2537_v39 }
 0x61e   : > { %1386 = vadd.xlane.f32.xlu1 %v1385_v62  ;;  %v2789_v62 = vld [vmem:[%s3786_s29 + $0x2c] sm:$0xf0]  ;;  %1657 = vmatpush.bf16.msra.mxu1 %v2517_v9 }
 0x61f   : > { %v2505_v0 = vor.u32 %v2789_v62, %v2504_v60  ;;  %v2840_v60 = vld [vmem:[%s3789_s17 + $0xc8] sm:$0xff]  ;;  %v2817_v62 = vld [vmem:[%s3789_s17 + $0x10] sm:$0xff]  ;;  %1982 = vmatpush.bf16.msra.mxu3 %v2825_v63 }
 0x620   : > { %1617 = vmatpush.bf16.msrb.mxu2 %v2521_v51  ;;  %v2834_v51 = vld [vmem:[%s3789_s17 + $0x98] sm:$0xff] }
 0x621   : > { %1994 = vmatpush.bf16.msrb.mxu0 %v2834_v51 }
 0x622   : > { %1658 = vmatpush.bf16.msra.mxu1 %v2501_v20 }
 0x623   : > { %1983 = vmatpush.bf16.msra.mxu3 %v2824_v3 }
 0x624   : > { %1618 = vmatpush.bf16.msrb.mxu2 %v2505_v0  ;;  %v2831_v0 = vld [vmem:[%s3789_s17 + $0x80] sm:$0xff] }
 0x625   : > { %1995 = vmatpush.bf16.msrb.mxu0 %v2833_v24 }
 0x626   : > { %2003 = vmatpush.bf16.msrb.mxu1 %v2846_v23 }
 0x627   : > { %1984 = vmatpush.bf16.msra.mxu3 %v2823_v6 }
 0x628   : > { %1619 = vmatpush.bf16.msrb.mxu2 %v2489_v13  ;;  %v1444_v13 = vperm.slane %v1442_v4, 0  ;;  %v2945_v4 = vld [vmem:[%s893_s16] ss:$0 sm:$0xff] }
 0x629   : > { %1996 = vmatpush.bf16.msrb.mxu0 %v2832_v59 }
 0x62a   : > { %2004 = vmatpush.bf16.msrb.mxu1 %v2845_v27 }
 0x62d   : > { %1997 = vmatpush.bf16.msrb.mxu0 %v2831_v0 }
 0x62e   : > { %2005 = vmatpush.bf16.msrb.mxu1 %v2844_v44 }
 0x632   : > { %2006 = vmatpush.bf16.msrb.mxu1 %v2843_v48 }
 0x636   : > { %2007 = vmatpush.bf16.msrb.mxu1 %v2842_v52 }
 0x63a   : > { %2008 = vmatpush.bf16.msrb.mxu1 %v2841_v55 }
 0x63e   : > { %2009 = vmatpush.bf16.msrb.mxu1 %v2840_v60 }
 0x642   : > { %2010 = vmatpush.bf16.msrb.mxu1 %v2839_v1 }
 0x691   : > { %v1387_v21 = vpop.xlane.xlu1 %1386 }
 0x692   : > { %v1388_v25 = vmul.f32 %v1387_v21, %v3549_v58 }
 0x694   : > { %v1389_v28 = vadd.f32 1e-05, %v1388_v25 }
 0x696   : > { %2958 = vrsqrt.f32 %v1389_v28  ;;  %vm1396_vm5 = vweird.f32 %v1389_v28 }
 0x69c   : > { %v2959_v29 = vpop.eup %2958 }
 0x69d   : > { %v1391_v30 = vmul.f32 %v2959_v29, %v1389_v28  ;;  %vm1397_vm4 = vweird.f32 %v2959_v29 }
 0x69e   : > { %vm1398_vm6 = vmor %vm1396_vm5, %vm1397_vm4 }
 0x69f   : > { %v1392_v31 = vmul.f32 %v2959_v29, %v1391_v30 }
 0x6a1   : > { %v1393_v32 = vmul.f32 0.5, %v1392_v31 }
 0x6a3   : > { %v1394_v33 = vsub.f32 1.5, %v1393_v32 }
 0x6a5   : > { %v1395_v34 = vmul.f32 %v2959_v29, %v1394_v33 }
 0x6a7   : > { %v1399_v36 = vsel %vm1398_vm6, %v2959_v29, %v1395_v34 }
 0x6a8   : > { %v1400_v37 = vmul.f32 %v1399_v36, %v3552_v61  ;;  %v2822_v61 = vld [vmem:[%s3789_s17 + $0x38] sm:$0xff] }
 0x6a9   : > { %1964 = vmatpush.bf16.msra.mxu2 %v2822_v61 }
 0x6aa   : > { %v1404_v39 = vmul.f32 %v2943_v35, %v1400_v37 }
 0x6ac   : > { %v3628_v40 = vadd.f32 %v2944_v38, %v1404_v39 }
 0x6ad   : > { %1965 = vmatpush.bf16.msra.mxu2 %v2821_v45 }
 0x6ae   : > { %v1409_v41 = vpack.c.bf16 %v3628_v40, %v3628_v40 }
 0x6b0   : > { %1620 = vmatmul.bf16.vlgmr.msrb.gmra.mxu2 %v1409_v41  ;;  %1633 = vmatmul.bf16.vlgmr.msrb.gmra.mxu3 %v1409_v41 }
 0x6b1   : > { %1646 = vmatmul.bf16.vlgmr.msra.gmra.mxu0 %v1409_v41  ;;  %1659 = vmatmul.bf16.vlgmr.msra.gmra.mxu1 %v1409_v41 }
 0x6b2   : > { %1966 = vmatpush.bf16.msra.mxu2 %v2820_v49 }
 0x6b6   : > { %1967 = vmatpush.bf16.msra.mxu2 %v2819_v53 }
 0x6ba   : > { %1968 = vmatpush.bf16.msra.mxu2 %v2818_v56 }
 0x6be   : > { %1969 = vmatpush.bf16.msra.mxu2 %v2817_v62 }
 0x6c2   : > { %1970 = vmatpush.bf16.msra.mxu2 %v2816_v2 }
 0x6c6   : > { %1971 = vmatpush.bf16.msra.mxu2 %v2815_v5 }
 0x72e   : > { %v1647_v9 = vpop.f32.mrf.mxu0  ;;  %v1660_v10 = vpop.f32.mrf.mxu1 }
 0x72f   : > { %v1648_v11 = vadd.f32 %v1647_v9, %v1446_v7  ;;  %v1661_v12 = vadd.f32 %v1660_v10, %v1447_v8 }
 0x731   : > { %v1670_v15 = vmul.f32 0.044715, %v1648_v11  ;;  %v1671_v16 = vmul.f32 0.044715, %v1661_v12  ;;  %v1666_v46 = vmul.f32 0.5, %v1648_v11  ;;  %v1667_v48 = vmul.f32 0.5, %v1661_v12 }
 0x733   : > { %v1674_v17 = vmul.f32 %v1670_v15, %v1648_v11  ;;  %v1675_v18 = vmul.f32 %v1671_v16, %v1661_v12  ;;  %v1621_v19 = vpop.f32.mrf.mxu2  ;;  %v1634_v20 = vpop.f32.mrf.mxu3 }
 0x734   : > { %v1622_v21 = vadd.f32 %v1621_v19, %v1444_v13  ;;  %v1635_v22 = vadd.f32 %v1634_v20, %v1445_v14 }
 0x735   : > { %v1678_v23 = vmul.f32 %v1674_v17, %v1648_v11  ;;  %v1679_v25 = vmul.f32 %v1675_v18, %v1661_v12 }
 0x736   : > { %v1668_v26 = vmul.f32 0.044715, %v1622_v21  ;;  %v1669_v27 = vmul.f32 0.044715, %v1635_v22  ;;  %v1649_v28 = vpop.f32.mrf.mxu0  ;;  %v1662_v29 = vpop.f32.mrf.mxu1  ;;  %v1664_v55 = vmul.f32 0.5, %v1622_v21  ;;  %v1665_v57 = vmul.f32 0.5, %v1635_v22 }
 0x737   : > { %v1682_v30 = vadd.f32 %v1678_v23, %v1648_v11  ;;  %v1683_v31 = vadd.f32 %v1679_v25, %v1661_v12  ;;  %v2946_v28 = vld [vmem:[%s896_s25] ss:$0 sm:$0xff] }
 0x738   : > { %v1672_v32 = vmul.f32 %v1668_v26, %v1622_v21  ;;  %v1673_v33 = vmul.f32 %v1669_v27, %v1635_v22 }
 0x739   : > { %v1686_v34 = vmul.f32 0.7978846, %v1682_v30  ;;  %v1687_v35 = vmul.f32 0.7978846, %v1683_v31 }
 0x73a   : > { %v1676_v36 = vmul.f32 %v1672_v32, %v1622_v21  ;;  %v1677_v37 = vmul.f32 %v1673_v33, %v1635_v22 }
 0x73b   : > { %v1623_v38 = vpop.f32.mrf.mxu2  ;;  %v1636_v39 = vpop.f32.mrf.mxu3  ;;  %2960 = vtanh.f32 %v1686_v34 }
 0x73c   : > { %2962 = vtanh.f32 %v1687_v35  ;;  %v1680_v41 = vadd.f32 %v1676_v36, %v1622_v21  ;;  %v1681_v61 = vadd.f32 %v1677_v37, %v1635_v22 }
 0x73e   : > { %v1684_v42 = vmul.f32 0.7978846, %v1680_v41  ;;  %v1685_v43 = vmul.f32 0.7978846, %v1681_v61 }
 0x740   : > { %2964 = vtanh.f32 %v1684_v42 }
 0x741   : > { %v2961_v44 = vpop.eup %2960  ;;  %2966 = vtanh.f32 %v1685_v43 }
 0x742   : > { %v2963_v45 = vpop.eup %2962  ;;  %v1694_v47 = vadd.f32 1.0, %v2961_v44 }
 0x743   : > { %v1695_v49 = vadd.f32 1.0, %v2963_v45 }
 0x744   : > { %v1698_v50 = vmul.f32 %v1694_v47, %v1666_v46 }
 0x745   : > { %v1699_v51 = vmul.f32 %v1695_v49, %v1667_v48 }
 0x746   : > { %v2965_v52 = vpop.eup %2964  ;;  %v1702_v53 = vpack.c.bf16 %v1698_v50, %v1698_v50 }
 0x747   : > { %v2967_v54 = vpop.eup %2966  ;;  %v1703_v24 = vpack.c.bf16 %v1699_v51, %v1699_v51  ;;  %v1692_v56 = vadd.f32 1.0, %v2965_v52 }
 0x748   : > { %1998 = vmatmul.bf16.vlgmr.msrb.gmra.mxu0 %v1702_v53  ;;  %v1693_v59 = vadd.f32 1.0, %v2967_v54 }
 0x749   : > { %2011 = vmatmul.bf16.vlgmr.msrb.gmra.mxu1 %v1703_v24  ;;  %v1696_v60 = vmul.f32 %v1692_v56, %v1664_v55 }
 0x74a   : > { %v1697_v62 = vmul.f32 %v1693_v59, %v1665_v57 }
 0x74b   : > { %v1700_v63 = vpack.c.bf16 %v1696_v60, %v1696_v60 }
 0x74c   : > { %v1701_v0 = vpack.c.bf16 %v1697_v62, %v1697_v62 }
 0x74d   : > { %1972 = vmatmul.bf16.vlgmr.msra.gmra.mxu2 %v1700_v63 }
 0x74e   : > { %1985 = vmatmul.bf16.vlgmr.msra.gmra.mxu3 %v1701_v0 }
 0x7c5   : > { %v1999_v1 = vpop.f32.mrf.mxu0 }
 0x7c6   : > { %v2012_v2 = vpop.f32.mrf.mxu1 }
 0x7cd   : > { %v2001_v3 = vpop.f32.mrf.mxu0 }
 0x7ce   : > { %v2014_v5 = vpop.f32.mrf.mxu1 }
 0x7d0   : > { %v1973_v6 = vpop.f32.mrf.mxu2 }
 0x7d1   : > { %v1974_v7 = vadd.f32 %v2945_v4, %v1973_v6  ;;  %v1986_v8 = vpop.f32.mrf.mxu3 }
 0x7d3   : > { %v1987_v9 = vadd.f32 %v1986_v8, %v1974_v7 }
 0x7d5   : > { %v2000_v10 = vadd.f32 %v1999_v1, %v1987_v9 }
 0x7d7   : > { %v2013_v11 = vadd.f32 %v2012_v2, %v2000_v10 }
 0x7d8   : > { %v1975_v12 = vpop.f32.mrf.mxu2 }
 0x7d9   : > { %v1988_v13 = vpop.f32.mrf.mxu3  ;;  %v2016_v14 = vadd.f32 %v2013_v11, %v3628_v40 }
 0x7db   : > { %2019 = vadd.xlane.f32.xlu2 %v2016_v14 }
 0x84e   : > { %v2020_v15 = vpop.xlane.xlu2 %2019 }
 0x84f   : > { %v2021_v16 = vmul.f32 %v2020_v15, %v3549_v58 }
 0x851   : > { %v2022_v17 = vsub.f32 %v2016_v14, %v2021_v16 }
 0x853   : > { %v2023_v18 = vmul.f32 %v2022_v17, %v2022_v17 }
 0x855   : > { %2024 = vadd.xlane.f32.xlu2 %v2023_v18 }
 0x8c8   : > { %v2025_v19 = vpop.xlane.xlu2 %2024 }
 0x8c9   : > { %v2026_v20 = vmul.f32 %v2025_v19, %v3549_v58  ;;  %v2947_v58 = vld [vmem:[%s899_s9] ss:$0 sm:$0xff] }
 0x8cb   : > { %v2027_v21 = vadd.f32 1e-05, %v2026_v20 }
 0x8cd   : > { %2968 = vrsqrt.f32 %v2027_v21  ;;  %vm2034_vm8 = vweird.f32 %v2027_v21 }
 0x8d3   : > { %v2969_v22 = vpop.eup %2968 }
 0x8d4   : > { %v2029_v23 = vmul.f32 %v2969_v22, %v2027_v21  ;;  %vm2035_vm7 = vweird.f32 %v2969_v22 }
 0x8d5   : > { %vm2036_vm9 = vmor %vm2034_vm8, %vm2035_vm7 }
 0x8d6   : > { %v2030_v25 = vmul.f32 %v2969_v22, %v2029_v23 }
 0x8d8   : > { %v2031_v26 = vmul.f32 0.5, %v2030_v25 }
 0x8da   : > { %v2032_v27 = vsub.f32 1.5, %v2031_v26 }
 0x8dc   : > { %v2033_v40 = vmul.f32 %v2969_v22, %v2032_v27 }
 0x8de   : > { %v2037_v29 = vsel %vm2036_vm9, %v2969_v22, %v2033_v40 }
 0x8df   : > { %v2038_v30 = vmul.f32 %v2037_v29, %v2022_v17 }
 0x8e1   : > { %v2042_v31 = vmul.f32 %v2946_v28, %v2038_v30  ;;  %2051 = sbr.rel (%p2742_p3) target bundleno = 2281 (0x8e9), region = 112 }
 0x8e3   : > { %v2046_v32 = vadd.f32 %v2947_v58, %v2042_v31 }
 0x8e5   : > { %2047 = vst [vmem:[#allocation2] sm:$0xff] %v2046_v32 }
 0x8e6   : > { %v2052_v33 = vpack.c.bf16 %v2046_v32, %v2046_v32 }
 0x8e8   : > { %2053 = vst [vmem:[%s3464_s12] sm:$0xf] %v2052_v33 }
 0x8e9 PF: > { %s3797_s25 = sld [smem:[#allocation17_spill]] }
 0x8ea   : > { %s3798_s24 = sld [smem:[#allocation13_spill]] }
 0x8eb   : > { %s3800_s26 = sld [smem:[#allocation20_spill]] }
 0x8ec   : > { %s3801_s27 = sld [smem:[#allocation15_spill]] }
 0x8ed   : > { %s3802_s28 = sld [smem:[#allocation16_spill]] }
 0x8ee   : > { %s3803_s29 = sld [smem:[#allocation18_spill]] }
 0x8ef   : > { %s36_s30 = sadd.s32 1, %s3797_s25   ;;  %s3799_s25 = sld [smem:[#allocation14_spill]] }
 0x8f0   : > { %p33_p4 = scmp.ge.s32.totalorder %s36_s30, 6   ;;  %s3804_s0 = sld [smem:[#allocation19_spill]] }
 0x8f2   :  { %35 = sbr.rel (!%p33_p4) target bundleno = 27 (0x1b), region = 212 }
 0x8f7   :  { %2073 = vsyncpa [#allocation4], 1 }
 0x8f8   :  { %2075 = vsyncpa [#allocation4 + $0x1], 1 }
 0x8f9   :  { %2076 = vsyncpa [#allocation6], 1 }
 0x8fa   :  { %2078 = vsyncpa [#allocation6 + $0x1], 1 }
 0x8fb   :  { %2079 = vsyncpa [#allocation9], 1 }
 0x8fc   :  { %2081 = vsyncpa [#allocation9 + $0x1], 1 }

</bundles_post_ra>
